<compile_context>
chip_gen: v6e
topology: v6e:2x2x1
jax: 0.10.0
libtpu: 0.0.40
codegen_flags: <defaults>
</compile_context>

<pallas_src>
from functools import partial

import jax
import jax.numpy as jnp
from jax.experimental import pallas as pl
from jax.experimental.pallas import tpu as pltpu


def _same_block_kernel(*refs, W, Cin, KH, KW, tH, tCo,
                       has_halo, use_im2col, cdt):
    """One (batch, H-strip, Cout-tile) per grid step.

    refs (has_halo=True):  x, xtop, xbot, w, bias, out, xpad[, imcol]
    refs (has_halo=False): x,             w, bias, out, xpad[, imcol]

      x:     (1, tH, W, Cin)   main input strip
      xtop:  (1, 1, W, Cin)    single row just above the strip
      xbot:  (1, 1, W, Cin)    single row just below the strip
      w:     im2col path : (n_co, KH*KW*Cin, tCo)   BN-scale-folded, bf16
             9-dot path  : (n_co*KH*KW, Cin, tCo)
      bias:  (n_co, 1, tCo)    folded conv-bias + BN bias, f32
      out:   (1, tH, W, tCo)   lane-dense output tile
      xpad:  (tH+2, W+2, Cin)  zero-bordered padded strip (VMEM scratch)
      imcol: (tH*W, KH*KW*Cin) im2col matrix (VMEM scratch, Cin < 128 only)
    """
    if has_halo:
        x_ref, xtop_ref, xbot_ref, w_ref, bias_ref, o_ref = refs[:6]
        scratch = refs[6:]
    else:
        x_ref, w_ref, bias_ref, o_ref = refs[:4]
        xtop_ref = xbot_ref = None
        scratch = refs[4:]
    xpad_ref = scratch[0]
    imcol_ref = scratch[1] if use_im2col else None

    hi = pl.program_id(1)
    co = pl.program_id(2)
    n_h = pl.num_programs(1)

    # Build the padded strip (+ im2col) once per (n, H-strip); reused across
    # the innermost Cout-tile axis.  NOTE: relies on the Cout axis being the
    # innermost grid axis and marked "arbitrary" (never sharded / reordered).
    @pl.when(co == 0)
    def _build():
        xpad_ref[1:tH + 1, 1:W + 1, :] = x_ref[0].astype(cdt)

        # left / right zero columns (pad=1 in W)
        zcol = jnp.zeros((tH + 2, 1, Cin), cdt)
        xpad_ref[:, 0:1, :] = zcol
        xpad_ref[:, W + 1:W + 2, :] = zcol

        zrow = jnp.zeros((1, W, Cin), cdt)
        if has_halo:
            @pl.when(hi > 0)
            def _():
                xpad_ref[0:1, 1:W + 1, :] = xtop_ref[0].astype(cdt)

            @pl.when(hi == 0)
            def _():
                xpad_ref[0:1, 1:W + 1, :] = zrow

            @pl.when(hi < n_h - 1)
            def _():
                xpad_ref[tH + 1:tH + 2, 1:W + 1, :] = xbot_ref[0].astype(cdt)

            @pl.when(hi == n_h - 1)
            def _():
                xpad_ref[tH + 1:tH + 2, 1:W + 1, :] = zrow
        else:
            xpad_ref[0:1, 1:W + 1, :] = zrow
            xpad_ref[tH + 1:tH + 2, 1:W + 1, :] = zrow

        if use_im2col:
            # 9 shifted copies -> one large-K MXU operand (K = KH*KW*Cin).
            # TODO(synk): for very small Cin these column writes are lane-
            # misaligned; a lane-padded per-tap layout would avoid masked vst.
            for kh in range(KH):
                for kw in range(KW):
                    j = kh * KW + kw
                    patch = xpad_ref[kh:kh + tH, kw:kw + W, :]
                    imcol_ref[:, j * Cin:(j + 1) * Cin] = patch.reshape(tH * W, Cin)

    if use_im2col:
        # Single fused MXU matmul; weights are VMEM-resident, slice this tile.
        y = jnp.dot(imcol_ref[...], w_ref[co],
                    preferred_element_type=jnp.float32)
    else:
        # Cin >= 128: each tap already fills the MXU contraction depth, so skip
        # the im2col scratch and accumulate 9 matmuls on shifted strip views.
        y = None
        for kh in range(KH):
            for kw in range(KW):
                j = kh * KW + kw
                patch = xpad_ref[kh:kh + tH, kw:kw + W, :].reshape(tH * W, Cin)
                part = jnp.dot(patch, w_ref[co * KH * KW + j],
                               preferred_element_type=jnp.float32)
                y = part if y is None else y + part

    # BN scale is folded into the weights; epilogue = bias + ReLU (f32).
    y = y + bias_ref[co]
    y = jnp.maximum(y, 0.0)
    o_ref[0] = y.reshape(tH, W, tCo).astype(o_ref.dtype)


def _device_kind():
    try:
        return jax.devices()[0].device_kind.lower()
    except Exception:
        return ""


def _mxu_cout_tile():
    kind = _device_kind()
    # v6e / v7x have a 256-wide MXU; older generations are 128-wide.
    if any(t in kind for t in ("v6", "v7", "tpu7")):
        return 256
    return 128


def _vmem_budget_and_limit():
    kind = _device_kind()
    if "v7" in kind or "tpu7" in kind:
        # v7x: 64 MiB physical VMEM per TensorCore.
        return 28 * 2**20, 44 * 2**20, 56 * 2**20
    # v5e / v6e: 128 MiB physical VMEM.
    return 48 * 2**20, 64 * 2**20, 100 * 2**20


def same_block2d_nhwc(x_nhwc, weight_oihw, conv_bias, gamma, beta,
                      running_mean, running_var, eps=1e-5, *,
                      tile_h=None, tile_co=None,
                      compute_dtype=jnp.bfloat16, out_dtype=None):
    """NHWC entry point (preferred: keeps the network NHWC end-to-end)."""
    N, H, W, Cin = x_nhwc.shape
    Cout, Cin_w, KH, KW = weight_oihw.shape
    assert Cin_w == Cin, "groups != 1 not supported by this kernel"
    # TODO(synk): generic kernel_size / padding; specialized to the module's
    # default kernel_size=3, padding=1.
    assert KH == 3 and KW == 3, "kernel written for kernel_size=3, padding=1"
    out_dtype = jnp.dtype(out_dtype or x_nhwc.dtype)

    # ---- Cout tiling: 256-wide on v6e/v7x (full MXU width), 128 on v5e ------
    if tile_co is None:
        tile_co = 128 if Cout <= 128 else _mxu_cout_tile()
    assert tile_co % 128 == 0
    cout_p = ((Cout + tile_co - 1) // tile_co) * tile_co
    n_co = cout_p // tile_co

    # For Cin >= 128 each conv tap already fills the MXU contraction depth, so
    # the im2col scratch (9x strip VMEM + its store-bound build) is skipped.
    use_im2col = Cin < 128

    x_bytes = x_nhwc.dtype.itemsize
    o_bytes = out_dtype.itemsize
    c_bytes = jnp.dtype(compute_dtype).itemsize

    # ---- VMEM-budgeted H-strip size ------------------------------------------
    budget, base_limit, hard_cap = _vmem_budget_and_limit()
    w_resident = 2 * KH * KW * Cin * cout_p * c_bytes        # double-buffered

    def strip_bytes(th):
        return (2 * th * W * Cin * x_bytes                   # input strip x2
                + 4 * W * Cin * x_bytes                      # two 1-row halos x2
                + 2 * th * W * tile_co * o_bytes             # output strip x2
                + (th + 2) * (W + 2) * Cin * c_bytes         # padded strip
                + (KH * KW * th * W * Cin * c_bytes if use_im2col else 0)
                + w_resident + 8 * cout_p)

    if tile_h is None:
        cands = [h for h in range(8, min(H, 128) + 1, 8) if H % h == 0] or [H]
        tile_h = cands[0]
        for th in cands:
            if strip_bytes(th) <= budget:
                tile_h = th
        # With a single Cout tile and a single image there is only one grid
        # step per strip: prefer >= 2 strips so the next strip's DMA overlaps.
        if n_co == 1 and N == 1 and tile_h == H:
            smaller = [h for h in cands if h <= H // 2]
            if smaller:
                tile_h = smaller[-1]
    else:
        if tile_h > H or H % tile_h != 0:
            tile_h = H
    n_h = H // tile_h
    has_halo = n_h > 1

    vmem_limit = int(min(max(base_limit, strip_bytes(tile_h) + (8 << 20)),
                         hard_cap))

    # ---- fold eval-mode BatchNorm into the conv weights / bias (f32) ---------
    inv_std = jax.lax.rsqrt(running_var.astype(jnp.float32) + eps)
    scale = gamma.astype(jnp.float32) * inv_std
    bias = (conv_bias.astype(jnp.float32)
            - running_mean.astype(jnp.float32)) * scale + beta.astype(jnp.float32)

    w = jnp.transpose(weight_oihw, (2, 3, 1, 0)).astype(jnp.float32)  # (KH,KW,Cin,Cout)
    w = w * scale[None, None, None, :]                                # fold BN scale
    w = jnp.pad(w, ((0, 0), (0, 0), (0, 0), (0, cout_p - Cout))).astype(compute_dtype)
    if use_im2col:
        # (n_co, KH*KW*Cin, tile_co): one fused-K weight slab per Cout tile.
        w = w.reshape(KH * KW * Cin, n_co, tile_co).transpose(1, 0, 2)
        w_spec = pl.BlockSpec((n_co, KH * KW * Cin, tile_co),
                              lambda n, hi, co: (0, 0, 0))
    else:
        # (n_co*KH*KW, Cin, tile_co): per-tap weight slabs, index co*9 + tap.
        w = (w.reshape(KH * KW, Cin, n_co, tile_co)
              .transpose(2, 0, 1, 3).reshape(n_co * KH * KW, Cin, tile_co))
        w_spec = pl.BlockSpec((n_co * KH * KW, Cin, tile_co),
                              lambda n, hi, co: (0, 0, 0))
    bias = jnp.pad(bias, (0, cout_p - Cout)).reshape(n_co, 1, tile_co)
    b_spec = pl.BlockSpec((n_co, 1, tile_co), lambda n, hi, co: (0, 0, 0))
    # Constant index maps -> weight/bias blocks are DMAed once and stay
    # resident in VMEM for the whole grid (no per-(n, H-strip) re-fetch).

    x_spec = pl.BlockSpec((1, tile_h, W, Cin), lambda n, hi, co: (n, hi, 0, 0))
    in_specs = [x_spec]
    args = [x_nhwc]
    if has_halo:
        # 1-row halo fetches (last two dims stay full-extent so an H-block of 1
        # row is legal); clamped at the image edge, kernel substitutes zeros.
        top_spec = pl.BlockSpec(
            (1, 1, W, Cin),
            lambda n, hi, co: (n, jnp.maximum(hi * tile_h - 1, 0), 0, 0))
        bot_spec = pl.BlockSpec(
            (1, 1, W, Cin),
            lambda n, hi, co: (n, jnp.minimum((hi + 1) * tile_h, H - 1), 0, 0))
        in_specs += [top_spec, bot_spec]
        args += [x_nhwc, x_nhwc]
    in_specs += [w_spec, b_spec]
    args += [w, bias]

    scratch_shapes = [pltpu.VMEM((tile_h + 2, W + 2, Cin), compute_dtype)]
    if use_im2col:
        scratch_shapes.append(
            pltpu.VMEM((tile_h * W, KH * KW * Cin), compute_dtype))

    kern = partial(_same_block_kernel, W=W, Cin=Cin, KH=KH, KW=KW,
                   tH=tile_h, tCo=tile_co, has_halo=has_halo,
                   use_im2col=use_im2col, cdt=compute_dtype)

    out = pl.pallas_call(
        kern,
        out_shape=jax.ShapeDtypeStruct((N, H, W, cout_p), out_dtype),
        grid_spec=pltpu.PrefetchScalarGridSpec(
            num_scalar_prefetch=0,
            grid=(N, n_h, n_co),
            in_specs=in_specs,
            out_specs=pl.BlockSpec((1, tile_h, W, tile_co),
                                   lambda n, hi, co: (n, hi, 0, co)),
            scratch_shapes=scratch_shapes,
        ),
        compiler_params=pltpu.CompilerParams(
            # Cout axis must stay innermost + "arbitrary" (scratch reuse).
            dimension_semantics=("parallel", "parallel", "arbitrary"),
            vmem_limit_bytes=vmem_limit,
        ),
    )(*args)

    if cout_p != Cout:
        # TODO(synk): in a real network keep the zero-padded channels (and
        # bf16 / NHWC activations) downstream instead of this extra HBM pass.
        out = out[..., :Cout]
    return out


def same_block2d(x_nchw, weight_oihw, conv_bias, gamma, beta,
                 running_mean, running_var, eps=1e-5, **kwargs):
    """NCHW wrapper matching the PyTorch module's convention."""
    # TODO(synk): keep activations NHWC end-to-end in a real network (use
    # same_block2d_nhwc); these two transposes are extra full HBM passes.
    x = jnp.transpose(x_nchw, (0, 2, 3, 1))
    out = same_block2d_nhwc(x, weight_oihw, conv_bias, gamma, beta,
                            running_mean, running_var, eps, **kwargs)
    return jnp.transpose(out, (0, 3, 1, 2))


if __name__ == "__main__":
    def reference(x, w, b, gamma, beta, mean, var, eps=1e-5):
        # The fused kernel folds the BN scale into the weights at f32, feeds
        # the MXU with bf16 operands and accumulates in f32; the reference
        # quantizes at the same points (module math otherwise unchanged).
        scale = gamma * jax.lax.rsqrt(var + eps)
        wq = (w * scale.reshape(-1, 1, 1, 1)).astype(jnp.bfloat16).astype(jnp.float32)
        xq = x.astype(jnp.bfloat16).astype(jnp.float32)
        y = jax.lax.conv_general_dilated(
            xq, wq, (1, 1), ((1, 1), (1, 1)),
            dimension_numbers=("NCHW", "OIHW", "NCHW"),
            precision=jax.lax.Precision.HIGHEST)
        bias = (b - mean) * scale + beta
        y = y + bias.reshape(1, -1, 1, 1)
        return jnp.maximum(y, 0.0)

    def run_case(key, N, Cin, Cout, H, W, tile_h=None):
        kx, kw, kb, kg, kbt, km, kv = jax.random.split(key, 7)
        x = jax.random.normal(kx, (N, Cin, H, W), jnp.float32)
        wgt = jax.random.normal(kw, (Cout, Cin, 3, 3), jnp.float32) * 0.1
        b = jax.random.normal(kb, (Cout,), jnp.float32) * 0.1
        gamma = 1.0 + 0.2 * jax.random.normal(kg, (Cout,), jnp.float32)
        beta = 0.1 * jax.random.normal(kbt, (Cout,), jnp.float32)
        mean = 0.1 * jax.random.normal(km, (Cout,), jnp.float32)
        var = jnp.abs(1.0 + 0.2 * jax.random.normal(kv, (Cout,), jnp.float32))

        out = same_block2d(x, wgt, b, gamma, beta, mean, var, tile_h=tile_h)
        out = jax.block_until_ready(out)

        ref = reference(x, wgt, b, gamma, beta, mean, var)
        assert out.shape == (N, Cout, H, W)
        err = float(jnp.max(jnp.abs(out - ref)))
        assert jnp.allclose(out, ref, atol=2e-2, rtol=2e-2), f"mismatch: {err}"

    key = jax.random.PRNGKey(0)
    ks = jax.random.split(key, 5)
    # A: 2 H-strips (halo path) + fused im2col path, Cout padded 8 -> 128.
    run_case(ks[0], N=2, Cin=4, Cout=8, H=16, W=16, tile_h=8)
    # B: auto-tiling -> single strip (no-halo path) + fused im2col path.
    run_case(ks[1], N=2, Cin=4, Cout=8, H=16, W=16)
    # C: Cout > 128 exercises the Cout-tile handling (128- or 256-wide tiles
    #    depending on the device generation) with auto-tiling.
    run_case(ks[2], N=1, Cin=16, Cout=160, H=16, W=16)
    # D: Cin >= 128 exercises the no-im2col (9 accumulating matmuls) path,
    #    with halos.
    run_case(ks[3], N=1, Cin=128, Cout=128, H=16, W=16, tile_h=8)
    # E: no-im2col path, single strip (no halos).
    run_case(ks[4], N=2, Cin=128, Cout=128, H=16, W=16)
    print("KERNEL_OK")
</pallas_src>

<mosaic_0001>
module attributes {stable_mosaic.version = 11 : i64} {
  func.func @_same_block_kernel(%arg0: i32, %arg1: i32, %arg2: i32, %arg3: memref<1x8x16x4xf32, #tpu.memory_space<vmem>>, %arg4: memref<1x1x16x4xf32, #tpu.memory_space<vmem>>, %arg5: memref<1x1x16x4xf32, #tpu.memory_space<vmem>>, %arg6: memref<1x36x128xbf16, #tpu.memory_space<vmem>>, %arg7: memref<1x1x128xf32, #tpu.memory_space<vmem>>, %arg8: memref<1x8x16x128xf32, #tpu.memory_space<vmem>>, %arg9: memref<10x18x4xbf16, #tpu.memory_space<vmem>>, %arg10: memref<128x36xbf16, #tpu.memory_space<vmem>>) attributes {dimension_semantics = [#tpu.dimension_semantics<parallel>, #tpu.dimension_semantics<parallel>, #tpu.dimension_semantics<arbitrary>], iteration_bounds = array<i64: 2, 2, 1>, scalar_prefetch = 0 : i64, scratch_operands = 2 : i64, tpu.core_type = #tpu.core_type<tc>, window_params = [{transform_indices = @transform_0, window_bounds = array<i64: 1, 8, 16, 4>}, {transform_indices = @transform_1, window_bounds = array<i64: 1, 1, 16, 4>}, {transform_indices = @transform_2, window_bounds = array<i64: 1, 1, 16, 4>}, {pipeline_mode = #tpu.pipeline_mode<synchronous>, transform_indices = @transform_3, window_bounds = array<i64: 1, 36, 128>}, {pipeline_mode = #tpu.pipeline_mode<synchronous>, transform_indices = @transform_4, window_bounds = array<i64: 1, 1, 128>}, {transform_indices = @transform_5, window_bounds = array<i64: 1, 8, 16, 128>}]} {
    %c0_i32 = arith.constant 0 : i32
    %0 = arith.cmpi eq, %arg2, %c0_i32 : i32
    %1 = arith.extui %0 : i1 to i32
    %c0_i32_0 = arith.constant 0 : i32
    %2 = arith.cmpi ne, %1, %c0_i32_0 : i32
    scf.if %2 {
      %c0_11 = arith.constant 0 : index
      %c0_12 = arith.constant 0 : index
      %c0_13 = arith.constant 0 : index
      %c0_14 = arith.constant 0 : index
      %19 = vector.load %arg3[%c0_11, %c0_12, %c0_13, %c0_14] : memref<1x8x16x4xf32, #tpu.memory_space<vmem>>, vector<1x8x16x4xf32>
      %20 = vector.shape_cast %19 : vector<1x8x16x4xf32> to vector<8x16x4xf32>
      %21 = arith.truncf %20 : vector<8x16x4xf32> to vector<8x16x4xbf16>
      %c1 = arith.constant 1 : index
      %c1_15 = arith.constant 1 : index
      %c0_16 = arith.constant 0 : index
      %22 = vector.load %arg9[%c1, %c1_15, %c0_16] : memref<10x18x4xbf16, #tpu.memory_space<vmem>>, vector<8x16x4xbf16>
      tpu.vector_store %arg9[%c1, %c1_15, %c0_16], %21 {strides = array<i32>} : memref<10x18x4xbf16, #tpu.memory_space<vmem>>, vector<8x16x4xbf16>,
      %cst_17 = arith.constant 0.000000e+00 : bf16
      %23 = vector.broadcast %cst_17 : bf16 to vector<10x1x4xbf16>
      %c0_18 = arith.constant 0 : index
      %c0_19 = arith.constant 0 : index
      %c0_20 = arith.constant 0 : index
      %24 = vector.load %arg9[%c0_18, %c0_19, %c0_20] : memref<10x18x4xbf16, #tpu.memory_space<vmem>>, vector<10x1x4xbf16>
      tpu.vector_store %arg9[%c0_18, %c0_19, %c0_20], %23 {strides = array<i32>} : memref<10x18x4xbf16, #tpu.memory_space<vmem>>, vector<10x1x4xbf16>,
      %c0_21 = arith.constant 0 : index
      %c17 = arith.constant 17 : index
      %c0_22 = arith.constant 0 : index
      %25 = vector.load %arg9[%c0_21, %c17, %c0_22] : memref<10x18x4xbf16, #tpu.memory_space<vmem>>, vector<10x1x4xbf16>
      tpu.vector_store %arg9[%c0_21, %c17, %c0_22], %23 {strides = array<i32>} : memref<10x18x4xbf16, #tpu.memory_space<vmem>>, vector<10x1x4xbf16>,
      %cst_23 = arith.constant 0.000000e+00 : bf16
      %26 = vector.broadcast %cst_23 : bf16 to vector<1x16x4xbf16>
      %c0_i32_24 = arith.constant 0 : i32
      %27 = arith.cmpi sgt, %arg1, %c0_i32_24 : i32
      %28 = arith.extui %27 : i1 to i32
      %c0_i32_25 = arith.constant 0 : i32
      %29 = arith.cmpi ne, %28, %c0_i32_25 : i32
      scf.if %29 {
        %c0_67 = arith.constant 0 : index
        %c0_68 = arith.constant 0 : index
        %c0_69 = arith.constant 0 : index
        %c0_70 = arith.constant 0 : index
        %66 = vector.load %arg4[%c0_67, %c0_68, %c0_69, %c0_70] : memref<1x1x16x4xf32, #tpu.memory_space<vmem>>, vector<1x1x16x4xf32>
        %67 = vector.shape_cast %66 : vector<1x1x16x4xf32> to vector<1x16x4xf32>
        %68 = arith.truncf %67 : vector<1x16x4xf32> to vector<1x16x4xbf16>
        %c0_71 = arith.constant 0 : index
        %c1_72 = arith.constant 1 : index
        %c0_73 = arith.constant 0 : index
        %69 = vector.load %arg9[%c0_71, %c1_72, %c0_73] : memref<10x18x4xbf16, #tpu.memory_space<vmem>>, vector<1x16x4xbf16>
        tpu.vector_store %arg9[%c0_71, %c1_72, %c0_73], %68 {strides = array<i32>} : memref<10x18x4xbf16, #tpu.memory_space<vmem>>, vector<1x16x4xbf16>,
      } else {
      }
      %c0_i32_26 = arith.constant 0 : i32
      %30 = arith.cmpi eq, %arg1, %c0_i32_26 : i32
      %31 = arith.extui %30 : i1 to i32
      %c0_i32_27 = arith.constant 0 : i32
      %32 = arith.cmpi ne, %31, %c0_i32_27 : i32
      scf.if %32 {
        %c0_67 = arith.constant 0 : index
        %c1_68 = arith.constant 1 : index
        %c0_69 = arith.constant 0 : index
        %66 = vector.load %arg9[%c0_67, %c1_68, %c0_69] : memref<10x18x4xbf16, #tpu.memory_space<vmem>>, vector<1x16x4xbf16>
        tpu.vector_store %arg9[%c0_67, %c1_68, %c0_69], %26 {strides = array<i32>} : memref<10x18x4xbf16, #tpu.memory_space<vmem>>, vector<1x16x4xbf16>,
      } else {
      }
      %c1_i32 = arith.constant 1 : i32
      %33 = arith.cmpi slt, %arg1, %c1_i32 : i32
      %34 = arith.extui %33 : i1 to i32
      %c0_i32_28 = arith.constant 0 : i32
      %35 = arith.cmpi ne, %34, %c0_i32_28 : i32
      scf.if %35 {
        %c0_67 = arith.constant 0 : index
        %c0_68 = arith.constant 0 : index
        %c0_69 = arith.constant 0 : index
        %c0_70 = arith.constant 0 : index
        %66 = vector.load %arg5[%c0_67, %c0_68, %c0_69, %c0_70] : memref<1x1x16x4xf32, #tpu.memory_space<vmem>>, vector<1x1x16x4xf32>
        %67 = vector.shape_cast %66 : vector<1x1x16x4xf32> to vector<1x16x4xf32>
        %68 = arith.truncf %67 : vector<1x16x4xf32> to vector<1x16x4xbf16>
        %c9 = arith.constant 9 : index
        %c1_71 = arith.constant 1 : index
        %c0_72 = arith.constant 0 : index
        %69 = vector.load %arg9[%c9, %c1_71, %c0_72] : memref<10x18x4xbf16, #tpu.memory_space<vmem>>, vector<1x16x4xbf16>
        tpu.vector_store %arg9[%c9, %c1_71, %c0_72], %68 {strides = array<i32>} : memref<10x18x4xbf16, #tpu.memory_space<vmem>>, vector<1x16x4xbf16>,
      } else {
      }
      %c1_i32_29 = arith.constant 1 : i32
      %36 = arith.cmpi eq, %arg1, %c1_i32_29 : i32
      %37 = arith.extui %36 : i1 to i32
      %c0_i32_30 = arith.constant 0 : i32
      %38 = arith.cmpi ne, %37, %c0_i32_30 : i32
      scf.if %38 {
        %c9 = arith.constant 9 : index
        %c1_67 = arith.constant 1 : index
        %c0_68 = arith.constant 0 : index
        %66 = vector.load %arg9[%c9, %c1_67, %c0_68] : memref<10x18x4xbf16, #tpu.memory_space<vmem>>, vector<1x16x4xbf16>
        tpu.vector_store %arg9[%c9, %c1_67, %c0_68], %26 {strides = array<i32>} : memref<10x18x4xbf16, #tpu.memory_space<vmem>>, vector<1x16x4xbf16>,
      } else {
      }
      %c0_31 = arith.constant 0 : index
      %c0_32 = arith.constant 0 : index
      %c0_33 = arith.constant 0 : index
      %39 = vector.load %arg9[%c0_31, %c0_32, %c0_33] : memref<10x18x4xbf16, #tpu.memory_space<vmem>>, vector<8x16x4xbf16>
      %40 = vector.shape_cast %39 : vector<8x16x4xbf16> to vector<128x4xbf16>
      %c0_34 = arith.constant 0 : index
      %c0_35 = arith.constant 0 : index
      %41 = vector.load %arg10[%c0_34, %c0_35] : memref<128x36xbf16, #tpu.memory_space<vmem>>, vector<128x4xbf16>
      tpu.vector_store %arg10[%c0_34, %c0_35], %40 {strides = array<i32>} : memref<128x36xbf16, #tpu.memory_space<vmem>>, vector<128x4xbf16>,
      %c0_36 = arith.constant 0 : index
      %c1_37 = arith.constant 1 : index
      %c0_38 = arith.constant 0 : index
      %42 = vector.load %arg9[%c0_36, %c1_37, %c0_38] : memref<10x18x4xbf16, #tpu.memory_space<vmem>>, vector<8x16x4xbf16>
      %43 = vector.shape_cast %42 : vector<8x16x4xbf16> to vector<128x4xbf16>
      %c0_39 = arith.constant 0 : index
      %c4 = arith.constant 4 : index
      %44 = vector.load %arg10[%c0_39, %c4] : memref<128x36xbf16, #tpu.memory_space<vmem>>, vector<128x4xbf16>
      tpu.vector_store %arg10[%c0_39, %c4], %43 {strides = array<i32>} : memref<128x36xbf16, #tpu.memory_space<vmem>>, vector<128x4xbf16>,
      %c0_40 = arith.constant 0 : index
      %c2 = arith.constant 2 : index
      %c0_41 = arith.constant 0 : index
      %45 = vector.load %arg9[%c0_40, %c2, %c0_41] : memref<10x18x4xbf16, #tpu.memory_space<vmem>>, vector<8x16x4xbf16>
      %46 = vector.shape_cast %45 : vector<8x16x4xbf16> to vector<128x4xbf16>
      %c0_42 = arith.constant 0 : index
      %c8 = arith.constant 8 : index
      %47 = vector.load %arg10[%c0_42, %c8] : memref<128x36xbf16, #tpu.memory_space<vmem>>, vector<128x4xbf16>
      tpu.vector_store %arg10[%c0_42, %c8], %46 {strides = array<i32>} : memref<128x36xbf16, #tpu.memory_space<vmem>>, vector<128x4xbf16>,
      %c1_43 = arith.constant 1 : index
      %c0_44 = arith.constant 0 : index
      %c0_45 = arith.constant 0 : index
      %48 = vector.load %arg9[%c1_43, %c0_44, %c0_45] : memref<10x18x4xbf16, #tpu.memory_space<vmem>>, vector<8x16x4xbf16>
      %49 = vector.shape_cast %48 : vector<8x16x4xbf16> to vector<128x4xbf16>
      %c0_46 = arith.constant 0 : index
      %c12 = arith.constant 12 : index
      %50 = vector.load %arg10[%c0_46, %c12] : memref<128x36xbf16, #tpu.memory_space<vmem>>, vector<128x4xbf16>
      tpu.vector_store %arg10[%c0_46, %c12], %49 {strides = array<i32>} : memref<128x36xbf16, #tpu.memory_space<vmem>>, vector<128x4xbf16>,
      %c1_47 = arith.constant 1 : index
      %c1_48 = arith.constant 1 : index
      %c0_49 = arith.constant 0 : index
      %51 = vector.load %arg9[%c1_47, %c1_48, %c0_49] : memref<10x18x4xbf16, #tpu.memory_space<vmem>>, vector<8x16x4xbf16>
      %52 = vector.shape_cast %51 : vector<8x16x4xbf16> to vector<128x4xbf16>
      %c0_50 = arith.constant 0 : index
      %c16 = arith.constant 16 : index
      %53 = vector.load %arg10[%c0_50, %c16] : memref<128x36xbf16, #tpu.memory_space<vmem>>, vector<128x4xbf16>
      tpu.vector_store %arg10[%c0_50, %c16], %52 {strides = array<i32>} : memref<128x36xbf16, #tpu.memory_space<vmem>>, vector<128x4xbf16>,
      %c1_51 = arith.constant 1 : index
      %c2_52 = arith.constant 2 : index
      %c0_53 = arith.constant 0 : index
      %54 = vector.load %arg9[%c1_51, %c2_52, %c0_53] : memref<10x18x4xbf16, #tpu.memory_space<vmem>>, vector<8x16x4xbf16>
      %55 = vector.shape_cast %54 : vector<8x16x4xbf16> to vector<128x4xbf16>
      %c0_54 = arith.constant 0 : index
      %c20 = arith.constant 20 : index
      %56 = vector.load %arg10[%c0_54, %c20] : memref<128x36xbf16, #tpu.memory_space<vmem>>, vector<128x4xbf16>
      tpu.vector_store %arg10[%c0_54, %c20], %55 {strides = array<i32>} : memref<128x36xbf16, #tpu.memory_space<vmem>>, vector<128x4xbf16>,
      %c2_55 = arith.constant 2 : index
      %c0_56 = arith.constant 0 : index
      %c0_57 = arith.constant 0 : index
      %57 = vector.load %arg9[%c2_55, %c0_56, %c0_57] : memref<10x18x4xbf16, #tpu.memory_space<vmem>>, vector<8x16x4xbf16>
      %58 = vector.shape_cast %57 : vector<8x16x4xbf16> to vector<128x4xbf16>
      %c0_58 = arith.constant 0 : index
      %c24 = arith.constant 24 : index
      %59 = vector.load %arg10[%c0_58, %c24] : memref<128x36xbf16, #tpu.memory_space<vmem>>, vector<128x4xbf16>
      tpu.vector_store %arg10[%c0_58, %c24], %58 {strides = array<i32>} : memref<128x36xbf16, #tpu.memory_space<vmem>>, vector<128x4xbf16>,
      %c2_59 = arith.constant 2 : index
      %c1_60 = arith.constant 1 : index
      %c0_61 = arith.constant 0 : index
      %60 = vector.load %arg9[%c2_59, %c1_60, %c0_61] : memref<10x18x4xbf16, #tpu.memory_space<vmem>>, vector<8x16x4xbf16>
      %61 = vector.shape_cast %60 : vector<8x16x4xbf16> to vector<128x4xbf16>
      %c0_62 = arith.constant 0 : index
      %c28 = arith.constant 28 : index
      %62 = vector.load %arg10[%c0_62, %c28] : memref<128x36xbf16, #tpu.memory_space<vmem>>, vector<128x4xbf16>
      tpu.vector_store %arg10[%c0_62, %c28], %61 {strides = array<i32>} : memref<128x36xbf16, #tpu.memory_space<vmem>>, vector<128x4xbf16>,
      %c2_63 = arith.constant 2 : index
      %c2_64 = arith.constant 2 : index
      %c0_65 = arith.constant 0 : index
      %63 = vector.load %arg9[%c2_63, %c2_64, %c0_65] : memref<10x18x4xbf16, #tpu.memory_space<vmem>>, vector<8x16x4xbf16>
      %64 = vector.shape_cast %63 : vector<8x16x4xbf16> to vector<128x4xbf16>
      %c0_66 = arith.constant 0 : index
      %c32 = arith.constant 32 : index
      %65 = vector.load %arg10[%c0_66, %c32] : memref<128x36xbf16, #tpu.memory_space<vmem>>, vector<128x4xbf16>
      tpu.vector_store %arg10[%c0_66, %c32], %64 {strides = array<i32>} : memref<128x36xbf16, #tpu.memory_space<vmem>>, vector<128x4xbf16>,
    } else {
    }
    %c0 = arith.constant 0 : index
    %c0_1 = arith.constant 0 : index
    %3 = vector.load %arg10[%c0, %c0_1] : memref<128x36xbf16, #tpu.memory_space<vmem>>, vector<128x36xbf16>
    %4 = arith.index_cast %arg2 : i32 to index
    %c0_2 = arith.constant 0 : index
    %c0_3 = arith.constant 0 : index
    %5 = vector.load %arg6[%4, %c0_2, %c0_3] : memref<1x36x128xbf16, #tpu.memory_space<vmem>>, vector<1x36x128xbf16>
    %6 = vector.shape_cast %5 : vector<1x36x128xbf16> to vector<36x128xbf16>
    %cst = arith.constant dense<0.000000e+00> : vector<128x128xf32>
    %7 = tpu.matmul %3, %6, %cst {dimension_numbers = #tpu.dot_dimension_numbers<[1], [0], [0], [1], [0, 0, 1, 1], [], []>} : vector<128x36xbf16>, vector<36x128xbf16>, vector<128x128xf32> -> vector<128x128xf32>
    %8 = arith.index_cast %arg2 : i32 to index
    %c0_4 = arith.constant 0 : index
    %c0_5 = arith.constant 0 : index
    %9 = vector.load %arg7[%8, %c0_4, %c0_5] : memref<1x1x128xf32, #tpu.memory_space<vmem>>, vector<1x1x128xf32>
    %10 = vector.shape_cast %9 : vector<1x1x128xf32> to vector<1x128xf32>
    %11 = vector.broadcast %10 : vector<1x128xf32> to vector<128x128xf32>
    %12 = arith.addf %7, %11 : vector<128x128xf32>
    %cst_6 = arith.constant 0.000000e+00 : f32
    %13 = vector.broadcast %cst_6 : f32 to vector<128x128xf32>
    %14 = arith.maximumf %12, %13 : vector<128x128xf32>
    %15 = vector.shape_cast %14 : vector<128x128xf32> to vector<8x16x128xf32>
    %c0_7 = arith.constant 0 : index
    %c0_8 = arith.constant 0 : index
    %c0_9 = arith.constant 0 : index
    %c0_10 = arith.constant 0 : index
    %16 = vector.load %arg8[%c0_7, %c0_8, %c0_9, %c0_10] : memref<1x8x16x128xf32, #tpu.memory_space<vmem>>, vector<1x8x16x128xf32>
    %17 = vector.shape_cast %16 : vector<1x8x16x128xf32> to vector<8x16x128xf32>
    %18 = vector.shape_cast %15 : vector<8x16x128xf32> to vector<1x8x16x128xf32>
    tpu.vector_store %arg8[%c0_7, %c0_8, %c0_9, %c0_10], %18 {strides = array<i32>} : memref<1x8x16x128xf32, #tpu.memory_space<vmem>>, vector<1x8x16x128xf32>,
    return
  }
  func.func @transform_0(%arg0: i32, %arg1: i32, %arg2: i32) -> (i32, i32, i32, i32) {
    %c0_i32 = arith.constant 0 : i32
    %c0_i32_0 = arith.constant 0 : i32
    %c0_i32_1 = arith.constant 0 : i32
    return %arg0, %arg1, %c0_i32, %c0_i32_0 : i32, i32, i32, i32
  }
  func.func @transform_1(%arg0: i32, %arg1: i32, %arg2: i32) -> (i32, i32, i32, i32) {
    %c8_i32 = arith.constant 8 : i32
    %0 = arith.muli %arg1, %c8_i32 : i32
    %c1_i32 = arith.constant 1 : i32
    %1 = arith.subi %0, %c1_i32 : i32
    %c0_i32 = arith.constant 0 : i32
    %2 = arith.maxsi %1, %c0_i32 : i32
    %c0_i32_0 = arith.constant 0 : i32
    %c0_i32_1 = arith.constant 0 : i32
    %c0_i32_2 = arith.constant 0 : i32
    return %arg0, %2, %c0_i32_0, %c0_i32_1 : i32, i32, i32, i32
  }
  func.func @transform_2(%arg0: i32, %arg1: i32, %arg2: i32) -> (i32, i32, i32, i32) {
    %c1_i32 = arith.constant 1 : i32
    %0 = arith.addi %arg1, %c1_i32 : i32
    %c8_i32 = arith.constant 8 : i32
    %1 = arith.muli %0, %c8_i32 : i32
    %c15_i32 = arith.constant 15 : i32
    %2 = arith.minsi %1, %c15_i32 : i32
    %c0_i32 = arith.constant 0 : i32
    %c0_i32_0 = arith.constant 0 : i32
    %c0_i32_1 = arith.constant 0 : i32
    return %arg0, %2, %c0_i32, %c0_i32_0 : i32, i32, i32, i32
  }
  func.func @transform_3(%arg0: i32, %arg1: i32, %arg2: i32) -> (i32, i32, i32) {
    %c0_i32 = arith.constant 0 : i32
    %c0_i32_0 = arith.constant 0 : i32
    %c0_i32_1 = arith.constant 0 : i32
    %c0_i32_2 = arith.constant 0 : i32
    return %c0_i32, %c0_i32_0, %c0_i32_1 : i32, i32, i32
  }
  func.func @transform_4(%arg0: i32, %arg1: i32, %arg2: i32) -> (i32, i32, i32) {
    %c0_i32 = arith.constant 0 : i32
    %c0_i32_0 = arith.constant 0 : i32
    %c0_i32_1 = arith.constant 0 : i32
    %c0_i32_2 = arith.constant 0 : i32
    return %c0_i32, %c0_i32_0, %c0_i32_1 : i32, i32, i32
  }
  func.func @transform_5(%arg0: i32, %arg1: i32, %arg2: i32) -> (i32, i32, i32, i32) {
    %c0_i32 = arith.constant 0 : i32
    %c0_i32_0 = arith.constant 0 : i32
    return %arg0, %arg1, %c0_i32, %arg2 : i32, i32, i32, i32
  }
}

</mosaic_0001>

<bundles_post_ra>
// kernel: tpu_custom_call.1
= control target key start
LH: loop header
LB: loop body
LE: loop exit
PB: predicated region body
PF: predicated region fallthrough
CT: control target
= control target key end

     0   :  { %10 = vsyncpa [#allocation5], 0  ;;  %s4304_s0 = inlined_call_operand.vmem [shape: f32[2,16,16,4], index: 0, kind: input, shape index: {}]   ;;  %s4305_s1 = inlined_call_operand.vmem [shape: f32[2,16,16,4], index: 1, kind: input, shape index: {}]   ;;  %s4306_s2 = inlined_call_operand.vmem [shape: f32[2,16,16,4], index: 2, kind: input, shape index: {}]   ;;  %s4307_s3 = inlined_call_operand.vmem [shape: bf16[1,36,128], index: 3, kind: input, shape index: {}]   ;;  %s4308_s4 = inlined_call_operand.vmem [shape: f32[1,1,128], index: 4, kind: input, shape index: {}]   ;;  %s4309_s5 = inlined_call_operand.hbm [shape: f32[2,16,16,128], index: 5, kind: output, shape index: {}]  }
   0x1   :  { %12 = vsyncpa [#allocation5 + $0x1], 0  ;;  %s3235_s18 = smov 0   ;;  %s3237_s19 = smov 0  }
   0x2   :  { %s3239_s20 = smov 0   ;;  %s3241_s21 = smov 0  }
   0x3   :  { %s3243_s22 = smov 0   ;;  %s3245_s23 = smov 0  }
   0x4   :  { %s3247_s24 = smov 0   ;;  %s3249_s25 = smov 0  }
   0x5 LB: > { %s2828_s26 = sadd.s32 4294967295, %s3191_s25   ;;  %s2829_s27 = sadd.s32 4294967294, %s3191_s25   ;;  %s3191_s25 = sphi %s3249_s25, %s18_s25   ;;  %s3187_s24 = sphi %s3247_s24, %s4337_s24   ;;  %s3183_s23 = sphi %s3245_s23, %s4336_s23   ;;  %s3179_s22 = sphi %s3243_s22, %s4335_s22   ;;  %s3175_s21 = sphi %s3241_s21, %s4334_s21   ;;  %s3171_s20 = sphi %s3239_s20, %s4333_s20   ;;  %s3167_s19 = sphi %s3237_s19, %s4332_s19   ;;  %s3163_s18 = sphi %s3235_s18, %s4331_s18  }
   0x6   : > { %s33_s28 = sadd.s32 1, %s3183_s23  ;;  %s37_s29 = sadd.s32 1, %s3187_s24 }
   0x7   : > { %p35_p0 = scmp.ge.s32.totalorder %s33_s28, 2  ;;  %p200_p1 = scmp.ne.s32.totalorder %s3171_s20, %s3167_s19 }
   0x8   : > { %p201_p2 = scmp.eq.s32.totalorder %s2828_s26, 3  ;;  %p206_p5 = scmp.ne.s32.totalorder %s3167_s19, %s3163_s18 }
   0x9   : > { %s4339_s28 = smov (%p35_p0, %s33_s28), 0  ;;  %s4341_s29 = smov (!%p35_p0, %s37_s29), %s3187_s24 }
   0xa   : > { %4312 = sst [smem:[#allocation7_spill]] %s4339_s28  ;;  %s184_s30 = ssub.s32 %s3183_s23, %s4339_s28 }
   0xb   : > { %p3286_p3 = por %p201_p2, %p200_p1  ;;  %p39_p4 = scmp.ge.s32.totalorder %s4341_s29, 2 }
   0xc   : > { %p207_p6 = scmp.eq.s32.totalorder %s2829_s27, 3  ;;  %p2838_p7 = scmp.ge.s32.totalorder %s3191_s25, 1 }
   0xd   : > { %s4343_s29 = smov (%p39_p4, %s4341_s29), 0  ;;  %p285_p9 = scmp.lt.s32.totalorder %s3191_s25, 5 }
   0xe   : > { %4314 = sst [smem:[#allocation8_spill]] %s4343_s29  ;;  %p3295_p8 = por %p207_p6, %p206_p5 }
   0xf   : > { %s183_s8 = ssub.s32 %s3187_s24, %s4343_s29  ;;  %s190_s9 = sadd.s32 1, %s3171_s20 }
  0x10   : > { %s185_s10 = sor.u32 %s184_s30, %s183_s8  ;;  %p286_p10 = pnand %p2838_p7, %p285_p9 }
  0x11   : > { %p188_p11 = scmp.eq.s32.totalorder %s185_s10, 0  ;;  %s341_s12 = sand.u32 (!%p286_p10), 1, %s3167_s19  }
  0x12   : > { %289 = sbr.rel (%p286_p10) target bundleno = 736 (0x2e0), region = 40  ;;  %s2840_s13 = sshll.u32 (!%p286_p10), %s3175_s21, 3 }
  0x13   : > { %s3304_s11 = scalar_select %p188_p11, %s3171_s20, %s190_s9  }
  0x14   : > { %s3310_s14 = sshll.u32 (!%p286_p10), %s341_s12, 7  ;;  %p345_p12 = scmp.lt.s32.totalorder (!%p286_p10), %s3179_s22, 1 }
  0x15   : > { %p347_p13 = scmp.lt.s32.totalorder (!%p286_p10), %s2840_s13, 15  ;;  %s2845_s26 = sadd.s32 (!%p286_p10), 4294967295, %s2840_s13 }
  0x16   : > { %p357_p0 = scmp.gt.s32.totalorder (!%p286_p10), %s2845_s26, 0  ;;  %p2846_p1 = scmp.lt.s32.totalorder (!%p286_p10), %s2845_s26, 15 }
  0x17   : > { %s346_s15 = scalar_select %p345_p12, %s3179_s22, 1  ;;  %vm459_vm0 = vsmask.f32 256  ;;  %vm623_vm1 = vcmask 27648   ;;  %vm631_vm2 = vcmask 24576  }
  0x18   : > { %s348_s16 = scalar_select %p347_p13, %s2840_s13, 15  ;;  %vm624_vm3 = vsmask.f32 7938  ;;  %v626_v18 = vld [vmem:[#allocation2 + $0xc] sm:$0xf]  ;;  %vm3355_vm4 = vmand %vm631_vm2, %vm459_vm0 }
  0x19   : > { %s3314_s17 = sshll.u32 %s346_s15, 5  ;;  %s2943_s9 = sadd.s32 8, %s2840_s13  ;;  %v633_v19 = vld [vmem:[#allocation2 + $0x14] sm:$0x1]  ;;  %v636_v21 = vld [vmem:[#allocation2 + $0x18] sm:$0xf]  ;;  %vm3367_vm5 = vmand %vm623_vm1, %vm624_vm3 }
  0x1a   : > { %s2841_s27 = sshll.u32 %s348_s16, 1  ;;  %p3322_p2 = scmp.lt.s32.totalorder %s2943_s9, 15  ;;  %v640_v29 = vld [vmem:[#allocation2 + $0x20] sm:$0x1]  ;;  %v643_v34 = vld [vmem:[#allocation2 + $0x24] sm:$0xf]  ;;  %vm3517_vm8 = vmand %vm631_vm2, %vm624_vm3 }
  0x1b   : > { %s351_s30 = sadd.s32 %s3314_s17, %s2841_s27  ;;  %v647_v41 = vld [vmem:[#allocation2 + $0x2c] sm:$0x1]  ;;  %v650_v60 = vld [vmem:[#allocation2 + $0x30] sm:$0xf]  ;;  %vm460_vm6 = vsmask.f32 4368 }
  0x1c   : > { %s2843_s8 = sshll.u32 %s351_s30, 3  ;;  %s4345_s9 = smov (!%p3322_p2, %s2943_s9), 15  ;;  %vm3472_vm7 = vmor %vm459_vm0, %vm460_vm6 }
  0x1d   : > { %s3320_s28 = scalar_lea.vmem %s4304_s0, %s2843_s8  ;;  %s4349_s9 = smov (!%p3322_p2, %s4345_s9), 15 }
  0x1e   : > { %s358_s16 = scalar_select %p357_p0, %s2845_s26, 0  ;;  %v395_v0 = vld [vmem:[%s3320_s28] sm:$0xff]  ;;  %v396_v1 = vld [vmem:[%s3320_s28 + $0x8] sm:$0xff]  ;;  %v397_v2 = vld [vmem:[%s3320_s28 + $0x10] sm:$0xff] }
  0x1f   : > { %v2944_v3 = vpack.c.bf16 %v395_v0, %v395_v0  ;;  %v3333_v4 = vpack.c.bf16 %v396_v1, %v396_v1  ;;  %v2946_v5 = vpack.c.bf16 %v397_v2, %v397_v2  ;;  %v398_v6 = vld [vmem:[%s3320_s28 + $0x18] sm:$0xff]  ;;  %v399_v7 = vld [vmem:[%s3320_s28 + $0x20] sm:$0xff]  ;;  %v400_v8 = vld [vmem:[%s3320_s28 + $0x28] sm:$0xff]  ;;  %s2858_s26 = sshll.u32 %s4349_s9, 1  ;;  %p2877_p4 = scmp.le.s32.totalorder %s3175_s21, 0 }
  0x20   : > { %s4347_s16 = smov (!%p2846_p1, %s358_s16), 15  ;;  %v3339_v9 = vpack.c.bf16 %v398_v6, %v398_v6  ;;  %v2948_v10 = vpack.c.bf16 %v399_v7, %v399_v7  ;;  %v3341_v11 = vpack.c.bf16 %v400_v8, %v400_v8  ;;  %v401_v12 = vld [vmem:[%s3320_s28 + $0x30] sm:$0xff]  ;;  %v402_v17 = vld [vmem:[%s3320_s28 + $0x38] sm:$0xff]  ;;  %s382_s30 = sadd.s32 %s2858_s26, %s3314_s17  ;;  %v403_v46 = vld [vmem:[%s3320_s28 + $0x40] sm:$0xff] }
  0x21   : > { %v463_v13 = vshrl.u32 %v2944_v3, 16  ;;  %v466_v14 = vshll.u32 %v2944_v3, 16  ;;  %v471_v15 = vshrl.u32 %v3333_v4, 16  ;;  %v480_v16 = vshrl.u32 %v2946_v5, 16  ;;  %s2851_s29 = sshll.u32 %s4347_s16, 1  ;;  %s2860_s10 = sshll.u32 %s382_s30, 3 }
  0x22   : > { %v483_v20 = vshll.u32 %v2946_v5, 16  ;;  %v488_v22 = vshrl.u32 %v3339_v9, 16  ;;  %v497_v23 = vshrl.u32 %v2948_v10, 16  ;;  %v500_v24 = vshll.u32 %v2948_v10, 16  ;;  %s365_s13 = sadd.s32 %s2851_s29, %s3314_s17  ;;  %s3390_s29 = scalar_lea.vmem %s4306_s2, %s2860_s10  ;;  %v404_v47 = vld [vmem:[%s3320_s28 + $0x48] sm:$0xff]  ;;  %v405_v48 = vld [vmem:[%s3320_s28 + $0x50] sm:$0xff] }
  0x23   : > { %v3351_v25 = vrot.slane %v463_v13, 7  ;;  %v3359_v27 = vrot.slane %v471_v15, 7  ;;  %v3361_v28 = vrot.slane %v480_v16, 7  ;;  %v505_v30 = vshrl.u32 %v3341_v11, 16  ;;  %s2853_s27 = sshll.u32 %s365_s13, 3  ;;  %v406_v53 = vld [vmem:[%s3320_s28 + $0x58] sm:$0xff] }
  0x24   : > { %v3371_v32 = vrot.slane %v488_v22, 7  ;;  %v3373_v33 = vrot.slane %v497_v23, 7  ;;  %v2950_v35 = vpack.c.bf16 %v401_v12, %v401_v12  ;;  %v3375_v36 = vpack.c.bf16 %v402_v17, %v402_v17  ;;  %s3380_s17 = scalar_lea.vmem %s4305_s1, %s2853_s27  ;;  %v407_v54 = vld [vmem:[%s3320_s28 + $0x60] sm:$0xff]  ;;  %v654_v2 = vld [vmem:[#allocation2 + $0x38] sm:$0x1]  ;;  %v408_v12 = vld [vmem:[%s3320_s28 + $0x68] sm:$0xff] }
  0x25   : > { %v468_v37 = vor.u32 %v466_v14, %v3351_v25  ;;  %v478_v38 = vrot.slane %v3359_v27, 4  ;;  %v485_v39 = vor.u32 %v483_v20, %v3361_v28  ;;  %v3385_v40 = vrot.slane %v505_v30, 7  ;;  %v657_v15 = vld [vmem:[#allocation2 + $0x3c] sm:$0xf]  ;;  %v409_v22 = vld [vmem:[%s3320_s28 + $0x70] sm:$0xff] }
  0x26   : > { %v495_v42 = vrot.slane %v3371_v32, 4  ;;  %v502_v43 = vor.u32 %v500_v24, %v3373_v33  ;;  %v514_v44 = vshrl.u32 %v2950_v35, 16  ;;  %v517_v45 = vshll.u32 %v2950_v35, 16  ;;  %v410_v23 = vld [vmem:[%s3320_s28 + $0x78] sm:$0xff]  ;;  %v664_v30 = vld [vmem:[#allocation2 + $0x48] sm:$0xf] }
  0x27   : > { %v627_v49 = vsel %vm3367_vm5, %v468_v37, %v626_v18  ;;  %v634_v50 = vsel %vm3355_vm4, %v478_v38, %v633_v19  ;;  %v637_v51 = vsel %vm3367_vm5, %v485_v39, %v636_v21  ;;  %v512_v52 = vrot.slane %v3385_v40, 4  ;;  %s3575_s28 = scalar_lea.vmem [#allocation4], %s3310_s14 }
  0x28   : > { %628 = vst [vmem:[#allocation2 + $0xc] sm:$0xf] %v627_v49  ;;  %635 = vst [vmem:[#allocation2 + $0x14] sm:$0x1] %v634_v50  ;;  %v641_v55 = vsel %vm3355_vm4, %v495_v42, %v640_v29  ;;  %v644_v56 = vsel %vm3367_vm5, %v502_v43, %v643_v34  ;;  %v3410_v57 = vrot.slane %v514_v44, 7  ;;  %v522_v58 = vshrl.u32 %v3375_v36, 16 }
  0x29   : > { %638 = vst [vmem:[#allocation2 + $0x18] sm:$0xf] %v637_v51  ;;  %642 = vst [vmem:[#allocation2 + $0x20] sm:$0x1] %v641_v55  ;;  %v648_v59 = vsel %vm3355_vm4, %v512_v52, %v647_v41  ;;  %v2952_v61 = vpack.c.bf16 %v403_v46, %v403_v46  ;;  %v3415_v62 = vpack.c.bf16 %v404_v47, %v404_v47  ;;  %v661_v29 = vld [vmem:[#allocation2 + $0x44] sm:$0x1] }
  0x2a   : > { %645 = vst [vmem:[#allocation2 + $0x24] sm:$0xf] %v644_v56  ;;  %v2954_v63 = vpack.c.bf16 %v405_v48, %v405_v48  ;;  %649 = vst [vmem:[#allocation2 + $0x2c] sm:$0x1] %v648_v59  ;;  %v519_v0 = vor.u32 %v517_v45, %v3410_v57  ;;  %v3418_v1 = vrot.slane %v522_v58, 7  ;;  %v3420_v3 = vpack.c.bf16 %v406_v53, %v406_v53 }
  0x2b   : > { %v2956_v5 = vpack.c.bf16 %v407_v54, %v407_v54  ;;  %v531_v6 = vshrl.u32 %v2952_v61, 16  ;;  %v534_v7 = vshll.u32 %v2952_v61, 16  ;;  %v539_v8 = vshrl.u32 %v3415_v62, 16  ;;  %v668_v42 = vld [vmem:[#allocation2 + $0x50] sm:$0x1] }
  0x2c   : > { %v548_v10 = vshrl.u32 %v2954_v63, 16  ;;  %v651_v13 = vsel %vm3367_vm5, %v519_v0, %v650_v60  ;;  %v529_v14 = vrot.slane %v3418_v1, 4  ;;  %v551_v16 = vshll.u32 %v2954_v63, 16  ;;  %v671_v45 = vld [vmem:[#allocation2 + $0x54] sm:$0xf] }
  0x2d   : > { %v556_v17 = vshrl.u32 %v3420_v3, 16  ;;  %652 = vst [vmem:[#allocation2 + $0x30] sm:$0xf] %v651_v13  ;;  %v3428_v18 = vrot.slane %v531_v6, 7  ;;  %v3430_v19 = vrot.slane %v539_v8, 7  ;;  %v565_v21 = vshrl.u32 %v2956_v5, 16 }
  0x2e   : > { %v3432_v20 = vrot.slane %v548_v10, 7  ;;  %v655_v24 = vsel %vm3355_vm4, %v529_v14, %v654_v2  ;;  %v568_v35 = vshll.u32 %v2956_v5, 16  ;;  %v3440_v37 = vpack.c.bf16 %v408_v12, %v408_v12  ;;  %v675_v59 = vld [vmem:[#allocation2 + $0x5c] sm:$0x1]  ;;  %v678_v8 = vld [vmem:[#allocation2 + $0x60] sm:$0xf] }
  0x2f   : > { %v3438_v34 = vrot.slane %v556_v17, 7  ;;  %656 = vst [vmem:[#allocation2 + $0x38] sm:$0x1] %v655_v24  ;;  %v536_v38 = vor.u32 %v534_v7, %v3428_v18  ;;  %v546_v39 = vrot.slane %v3430_v19, 4  ;;  %v3445_v43 = vrot.slane %v565_v21, 7 }
  0x30   : > { %v553_v41 = vor.u32 %v551_v16, %v3432_v20  ;;  %v573_v46 = vshrl.u32 %v3440_v37, 16  ;;  %v2958_v47 = vpack.c.bf16 %v409_v22, %v409_v22  ;;  %v3449_v48 = vpack.c.bf16 %v410_v23, %v410_v23  ;;  %v688_v23 = vld [vmem:[#allocation2 + $0xc] sm:$0x1]  ;;  %v691_v24 = vld [vmem:[#allocation2 + $0x18] sm:$0x1] }
  0x31   : > { %v563_v44 = vrot.slane %v3438_v34, 4  ;;  %v658_v49 = vsel %vm3367_vm5, %v536_v38, %v657_v15  ;;  %v662_v50 = vsel %vm3355_vm4, %v546_v39, %v661_v29  ;;  %v570_v52 = vor.u32 %v568_v35, %v3445_v43  ;;  %v682_v15 = vld [vmem:[#allocation2 + $0x68] sm:$0x1]  ;;  %v694_v35 = vld [vmem:[#allocation2 + $0x24] sm:$0x1] }
  0x32   : > { %v665_v51 = vsel %vm3367_vm5, %v553_v41, %v664_v30  ;;  %659 = vst [vmem:[#allocation2 + $0x3c] sm:$0xf] %v658_v49  ;;  %663 = vst [vmem:[#allocation2 + $0x44] sm:$0x1] %v662_v50  ;;  %v3460_v54 = vrot.slane %v573_v46, 7  ;;  %v582_v55 = vshrl.u32 %v2958_v47, 16 }
  0x33   : > { %666 = vst [vmem:[#allocation2 + $0x48] sm:$0xf] %v665_v51  ;;  %v669_v53 = vsel %vm3355_vm4, %v563_v44, %v668_v42  ;;  %v585_v56 = vshll.u32 %v2958_v47, 16  ;;  %v672_v58 = vsel %vm3367_vm5, %v570_v52, %v671_v45  ;;  %v590_v60 = vshrl.u32 %v3449_v48, 16  ;;  %v712_v44 = vld [vmem:[#allocation2 + $0x6c] sm:$0x1] }
  0x34   : > { %670 = vst [vmem:[#allocation2 + $0x50] sm:$0x1] %v669_v53  ;;  %v469_v61 = vrot.slane %v3351_v25, 4  ;;  %v474_v63 = vshll.u32 %v3333_v4, 16  ;;  %673 = vst [vmem:[#allocation2 + $0x54] sm:$0xf] %v672_v58 }
  0x35   : > { %v580_v0 = vrot.slane %v3460_v54, 4  ;;  %v3468_v2 = vrot.slane %v582_v55, 7  ;;  %v486_v6 = vrot.slane %v3361_v28, 4  ;;  %v491_v7 = vshll.u32 %v3339_v9, 16  ;;  %v697_v38 = vld [vmem:[#allocation2 + $0x30] sm:$0x1] }
  0x36   : > { %v592_v10 = vrot.slane %v590_v60, 7  ;;  %v476_v25 = vor.u32 %v474_v63, %v3359_v27  ;;  %v503_v4 = vrot.slane %v3373_v33, 4  ;;  %v508_v12 = vshll.u32 %v3341_v11, 16  ;;  %v685_v11 = vld [vmem:[#allocation2] sm:$0x1] }
  0x37   : > { %v676_v13 = vsel %vm3355_vm4, %v580_v0, %v675_v59  ;;  %v587_v14 = vor.u32 %v585_v56, %v3468_v2  ;;  %v493_v16 = vor.u32 %v491_v7, %v3371_v32  ;;  %v520_v28 = vrot.slane %v3410_v57, 4  ;;  %v716_v45 = vld [vmem:[#allocation2 + $0x8] sm:$0x1]  ;;  %v719_v49 = vld [vmem:[#allocation2 + $0x14] sm:$0x1] }
  0x38   : > { %677 = vst [vmem:[#allocation2 + $0x5c] sm:$0x1] %v676_v13  ;;  %v597_v9 = vrot.slane %v592_v10, 4  ;;  %v477_v17 = vsel %vm3472_vm7, %v469_v61, %v476_v25  ;;  %v510_v27 = vor.u32 %v508_v12, %v3385_v40  ;;  %v525_v33 = vshll.u32 %v3375_v36, 16  ;;  %v725_v50 = vld [vmem:[#allocation2 + $0x2c] sm:$0x1] }
  0x39   : > { %v679_v21 = vsel %vm3367_vm5, %v587_v14, %v678_v8  ;;  %630 = vst.msk [vmem:[#allocation2 + $0x10] sm:$0xf] %vm623_vm1, %v477_v17  ;;  %v494_v32 = vsel %vm3472_vm7, %v486_v6, %v493_v16  ;;  %v537_v57 = vrot.slane %v3428_v18, 4  ;;  %v542_v22 = vshll.u32 %v3415_v62, 16  ;;  %v700_v42 = vld [vmem:[#allocation2 + $0x3c] sm:$0x1] }
  0x3a   : > { %680 = vst [vmem:[#allocation2 + $0x60] sm:$0xf] %v679_v21  ;;  %v683_v40 = vsel %vm3355_vm4, %v597_v9, %v682_v15  ;;  %639 = vst.msk [vmem:[#allocation2 + $0x1c] sm:$0xf] %vm623_vm1, %v494_v32  ;;  %v511_v36 = vsel %vm3472_vm7, %v503_v4, %v510_v27  ;;  %v527_v29 = vor.u32 %v525_v33, %v3418_v1  ;;  %v554_v30 = vrot.slane %v3432_v20, 4 }
  0x3b   : > { %684 = vst [vmem:[#allocation2 + $0x68] sm:$0x1] %v683_v40  ;;  %646 = vst.msk [vmem:[#allocation2 + $0x28] sm:$0xf] %vm623_vm1, %v511_v36  ;;  %v544_v62 = vor.u32 %v542_v22, %v3430_v19  ;;  %v559_v18 = vshll.u32 %v3420_v3, 16  ;;  %v571_v39 = vrot.slane %v3445_v43, 4 }
  0x3c   : > { %v576_v41 = vshll.u32 %v3440_v37, 16  ;;  %v528_v1 = vsel %vm3472_vm7, %v520_v28, %v527_v29  ;;  %v588_v20 = vrot.slane %v3468_v2, 4  ;;  %v593_v46 = vshll.u32 %v3449_v48, 16  ;;  %v703_v19 = vld [vmem:[#allocation2 + $0x48] sm:$0x1] }
  0x3d   : > { %v686_v47 = vsel %vm3355_vm4, 0, %v685_v11  ;;  %v722_v3 = vld [vmem:[#allocation2 + $0x20] sm:$0x1]  ;;  %653 = vst.msk [vmem:[#allocation2 + $0x34] sm:$0xf] %vm623_vm1, %v528_v1  ;;  %v545_v43 = vsel %vm3472_vm7, %v537_v57, %v544_v62  ;;  %v561_v48 = vor.u32 %v559_v18, %v3438_v34  ;;  %v689_v52 = vsel %vm3355_vm4, 0, %v688_v23 }
  0x3e   : > { %v578_v51 = vor.u32 %v576_v41, %v3460_v54  ;;  %687 = vst [vmem:[#allocation2] sm:$0x1] %v686_v47  ;;  %v706_v53 = vld [vmem:[#allocation2 + $0x54] sm:$0x1]  ;;  %v728_v55 = vld [vmem:[#allocation2 + $0x38] sm:$0x1]  ;;  %v595_v56 = vor.u32 %v593_v46, %v592_v10 }
  0x3f   : > { %660 = vst.msk [vmem:[#allocation2 + $0x40] sm:$0xf] %vm623_vm1, %v545_v43  ;;  %690 = vst [vmem:[#allocation2 + $0xc] sm:$0x1] %v689_v52  ;;  %v692_v58 = vsel %vm3355_vm4, 0, %v691_v24  ;;  %v695_v59 = vsel %vm3355_vm4, 0, %v694_v35  ;;  %v562_v60 = vsel %vm3472_vm7, %v554_v30, %v561_v48 }
  0x40   : > { %v698_v34 = vsel %vm3355_vm4, 0, %v697_v38  ;;  %v731_v54 = vld [vmem:[#allocation2 + $0x44] sm:$0x1]  ;;  %v579_v61 = vsel %vm3472_vm7, %v571_v39, %v578_v51  ;;  %693 = vst [vmem:[#allocation2 + $0x18] sm:$0x1] %v692_v58  ;;  %v701_v63 = vsel %vm3355_vm4, 0, %v700_v42  ;;  %v596_v7 = vsel %vm3472_vm7, %v588_v20, %v595_v56 }
  0x41   : > { %696 = vst [vmem:[#allocation2 + $0x24] sm:$0x1] %v695_v59  ;;  %699 = vst [vmem:[#allocation2 + $0x30] sm:$0x1] %v698_v34  ;;  %v704_v0 = vsel %vm3355_vm4, 0, %v703_v19  ;;  %v707_v8 = vsel %vm3355_vm4, 0, %v706_v53 }
  0x42   : > { %v734_v2 = vld [vmem:[#allocation2 + $0x50] sm:$0x1]  ;;  %v737_v6 = vld [vmem:[#allocation2 + $0x5c] sm:$0x1]  ;;  %667 = vst.msk [vmem:[#allocation2 + $0x4c] sm:$0xf] %vm623_vm1, %v562_v60 }
  0x43   : > { %674 = vst.msk [vmem:[#allocation2 + $0x58] sm:$0xf] %vm623_vm1, %v579_v61  ;;  %702 = vst [vmem:[#allocation2 + $0x3c] sm:$0x1] %v701_v63  ;;  %v713_v10 = vsel %vm3355_vm4, 0, %v712_v44  ;;  %v717_v25 = vsel %vm3517_vm8, 0, %v716_v45 }
  0x44   : > { %705 = vst [vmem:[#allocation2 + $0x48] sm:$0x1] %v704_v0  ;;  %v743_v4 = vld [vmem:[#allocation2 + $0x74] sm:$0x1]  ;;  %681 = vst.msk [vmem:[#allocation2 + $0x64] sm:$0xf] %vm623_vm1, %v596_v7 }
  0x45   : > { %708 = vst [vmem:[#allocation2 + $0x54] sm:$0x1] %v707_v8  ;;  %v709_v12 = vld [vmem:[#allocation2 + $0x60] sm:$0x1]  ;;  %714 = vst [vmem:[#allocation2 + $0x6c] sm:$0x1] %v713_v10 }
  0x46   : > { %718 = vst [vmem:[#allocation2 + $0x8] sm:$0x1] %v717_v25  ;;  %v720_v13 = vsel %vm3517_vm8, 0, %v719_v49  ;;  %v723_v14 = vsel %vm3517_vm8, 0, %v722_v3  ;;  %v726_v15 = vsel %vm3517_vm8, 0, %v725_v50  ;;  %v729_v16 = vsel %vm3517_vm8, 0, %v728_v55 }
  0x47   : > { %v710_v28 = vsel %vm3355_vm4, 0, %v709_v12  ;;  %721 = vst [vmem:[#allocation2 + $0x14] sm:$0x1] %v720_v13  ;;  %724 = vst [vmem:[#allocation2 + $0x20] sm:$0x1] %v723_v14  ;;  %v732_v9 = vsel %vm3517_vm8, 0, %v731_v54 }
  0x48   : > { %727 = vst [vmem:[#allocation2 + $0x2c] sm:$0x1] %v726_v15  ;;  %730 = vst [vmem:[#allocation2 + $0x38] sm:$0x1] %v729_v16  ;;  %v735_v17 = vsel %vm3517_vm8, 0, %v734_v2  ;;  %v738_v27 = vsel %vm3517_vm8, 0, %v737_v6 }
  0x49   : > { %v740_v33 = vld [vmem:[#allocation2 + $0x68] sm:$0x1]  ;;  %711 = vst [vmem:[#allocation2 + $0x60] sm:$0x1] %v710_v28  ;;  %733 = vst [vmem:[#allocation2 + $0x44] sm:$0x1] %v732_v9 }
  0x4a   : > { %736 = vst [vmem:[#allocation2 + $0x50] sm:$0x1] %v735_v17  ;;  %739 = vst [vmem:[#allocation2 + $0x5c] sm:$0x1] %v738_v27  ;;  %v741_v11 = vsel %vm3517_vm8, 0, %v740_v33  ;;  %v744_v21 = vsel %vm3517_vm8, 0, %v743_v4 }
  0x4b   : > { %742 = vst [vmem:[#allocation2 + $0x68] sm:$0x1] %v741_v11  ;;  %745 = vst [vmem:[#allocation2 + $0x74] sm:$0x1] %v744_v21  ;;  %749 = sbr.rel (%p2877_p4) target bundleno = 92 (0x5c), region = 48 }
  0x50   : > { %v750_v32 = vld [vmem:[%s3380_s17] sm:$0xff]  ;;  %v751_v57 = vld [vmem:[%s3380_s17 + $0x8] sm:$0xff] }
  0x51   : > { %v2960_v22 = vpack.c.bf16 %v750_v32, %v750_v32  ;;  %v2961_v23 = vpack.c.bf16 %v751_v57, %v751_v57  ;;  %v778_v38 = vld [vmem:[#allocation2] sm:$0xf]  ;;  %v782_v62 = vld [vmem:[#allocation2 + $0x8] sm:$0x1] }
  0x53   : > { %v759_v24 = vshrl.u32 %v2960_v22, 16  ;;  %v762_v40 = vshll.u32 %v2960_v22, 16  ;;  %v767_v36 = vshrl.u32 %v2961_v23, 16  ;;  %v770_v29 = vshll.u32 %v2961_v23, 16 }
  0x55   : > { %v761_v30 = vrot.slane %v759_v24, 7  ;;  %v769_v35 = vrot.slane %v767_v36, 7 }
  0x57   : > { %v764_v18 = vor.u32 %v762_v40, %v761_v30  ;;  %v765_v39 = vrot.slane %v761_v30, 4  ;;  %v772_v41 = vor.u32 %v770_v29, %v769_v35  ;;  %v774_v42 = vrot.slane %v769_v35, 4 }
  0x59   : > { %v779_v44 = vsel %vm3367_vm5, %v764_v18, %v778_v38  ;;  %v773_v45 = vsel %vm3472_vm7, %v765_v39, %v772_v41  ;;  %v783_v1 = vsel %vm3355_vm4, %v774_v42, %v782_v62 }
  0x5a   : > { %780 = vst [vmem:[#allocation2] sm:$0xf] %v779_v44  ;;  %781 = vst.msk [vmem:[#allocation2 + $0x4] sm:$0xf] %vm623_vm1, %v773_v45 }
  0x5b   : > { %784 = vst [vmem:[#allocation2 + $0x8] sm:$0x1] %v783_v1 }
  0x5c PF: > { %p2880_p5 = scmp.ne.s32.totalorder %s3175_s21, 0 }
  0x5e   : > { %788 = sbr.rel (%p2880_p5) target bundleno = 102 (0x66), region = 52 }
  0x63   : > { %v789_v20 = vld [vmem:[#allocation2] sm:$0xf]  ;;  %v793_v46 = vld [vmem:[#allocation2 + $0x8] sm:$0x1]  ;;  %v3193_v19 = vmov 0  }
  0x64   : > { %v790_v47 = vsel %vm3367_vm5, 0, %v789_v20  ;;  %792 = vst.msk [vmem:[#allocation2 + $0x4] sm:$0xf] %vm623_vm1, %v3193_v19  ;;  %v794_v49 = vsel %vm3355_vm4, 0, %v793_v46 }
  0x65   : > { %791 = vst [vmem:[#allocation2] sm:$0xf] %v790_v47  ;;  %795 = vst [vmem:[#allocation2 + $0x8] sm:$0x1] %v794_v49 }
  0x66 PF: > { %p2881_p6 = scmp.ge.s32.totalorder %s3175_s21, 1 }
  0x68   : > { %799 = sbr.rel (%p2881_p6) target bundleno = 121 (0x79), region = 56 }
  0x6d   : > { %v800_v3 = vld [vmem:[%s3390_s29] sm:$0xff]  ;;  %v801_v50 = vld [vmem:[%s3390_s29 + $0x8] sm:$0xff]  ;;  %v833_v59 = vld [vmem:[#allocation2 + $0x74] sm:$0x1] }
  0x6e   : > { %v2962_v37 = vpack.c.bf16 %v800_v3, %v800_v3  ;;  %v2963_v43 = vpack.c.bf16 %v801_v50, %v801_v50  ;;  %v829_v58 = vld [vmem:[#allocation2 + $0x6c] sm:$0xf] }
  0x70   : > { %v809_v48 = vshrl.u32 %v2962_v37, 16  ;;  %v812_v51 = vshll.u32 %v2962_v37, 16  ;;  %v817_v52 = vshrl.u32 %v2963_v43, 16  ;;  %v820_v53 = vshll.u32 %v2963_v43, 16 }
  0x72   : > { %v811_v55 = vrot.slane %v809_v48, 7  ;;  %v819_v56 = vrot.slane %v817_v52, 7 }
  0x74   : > { %v814_v34 = vor.u32 %v812_v51, %v811_v55  ;;  %v815_v54 = vrot.slane %v811_v55, 4  ;;  %v822_v60 = vor.u32 %v820_v53, %v819_v56  ;;  %v824_v61 = vrot.slane %v819_v56, 4 }
  0x76   : > { %v830_v63 = vsel %vm3367_vm5, %v814_v34, %v829_v58  ;;  %v823_v0 = vsel %vm3472_vm7, %v815_v54, %v822_v60  ;;  %v834_v2 = vsel %vm3355_vm4, %v824_v61, %v833_v59 }
  0x77   : > { %831 = vst [vmem:[#allocation2 + $0x6c] sm:$0xf] %v830_v63  ;;  %832 = vst.msk [vmem:[#allocation2 + $0x70] sm:$0xf] %vm623_vm1, %v823_v0 }
  0x78   : > { %835 = vst [vmem:[#allocation2 + $0x74] sm:$0x1] %v834_v2 }
  0x79 PF: > { %p2884_p7 = scmp.ne.s32.totalorder %s3175_s21, 1 }
  0x7b   : > { %839 = sbr.rel (%p2884_p7) target bundleno = 131 (0x83), region = 60 }
  0x80   : > { %v841_v6 = vld [vmem:[#allocation2 + $0x6c] sm:$0xf]  ;;  %v845_v7 = vld [vmem:[#allocation2 + $0x74] sm:$0x1]  ;;  %v3194_v10 = vmov 0  }
  0x81   : > { %v842_v8 = vsel %vm3367_vm5, 0, %v841_v6  ;;  %844 = vst.msk [vmem:[#allocation2 + $0x70] sm:$0xf] %vm623_vm1, %v3194_v10  ;;  %v846_v5 = vsel %vm3355_vm4, 0, %v845_v7 }
  0x82   : > { %843 = vst [vmem:[#allocation2 + $0x6c] sm:$0xf] %v842_v8  ;;  %847 = vst [vmem:[#allocation2 + $0x74] sm:$0x1] %v846_v5 }
  0x83 PF: > { %v892_v25 = vld [vmem:[#allocation2 + $0x30] sm:$0xf]  ;;  %v893_v4 = vld [vmem:[#allocation2 + $0x34] sm:$0xf]  ;;  %vm904_vm9 = vsmask.f32 3328 }
  0x84   : > { %vm905_vm10 = vsmask.f32 7440  ;;  %v1004_v12 = vshrl.u32 %v892_v25, 16  ;;  %v1007_v13 = vshll.u32 %v892_v25, 16  ;;  %v1013_v14 = vshll.u32 %v893_v4, 16  ;;  %s3195_s14 = smov 4  }
  0x85   : > { %v1017_v15 = vshrl.u32 %v893_v4, 16  ;;  %v880_v16 = vld [vmem:[#allocation2] sm:$0xf]  ;;  %v881_v31 = vld [vmem:[#allocation2 + $0x4] sm:$0xf]  ;;  %vm3611_vm11 = vmor %vm904_vm9, %vm905_vm10  ;;  %vm1212_vm12 = vcmask 1042432  }
  0x86   : > { %v1006_v28 = vrot.slane %v1004_v12, 4  ;;  %v1009_v9 = vrot.slane %v1007_v13, 5  ;;  %v1015_v17 = vrot.slane %v1013_v14, 5  ;;  %v908_v27 = vshrl.u32 %v880_v16, 16  ;;  %v894_v33 = vld [vmem:[#allocation2 + $0x38] sm:$0x1] }
  0x87   : > { %v1019_v26 = vrot.slane %v1017_v15, 4  ;;  %v911_v11 = vshll.u32 %v880_v16, 16  ;;  %v917_v21 = vshll.u32 %v881_v31, 16  ;;  %v921_v32 = vshrl.u32 %v881_v31, 16  ;;  %v882_v57 = vld [vmem:[#allocation2 + $0x8] sm:$0x1] }
  0x88   : > { %v1010_v22 = vor.u32 %v1009_v9, %v1006_v28  ;;  %v910_v23 = vrot.slane %v908_v27, 4  ;;  %v1023_v24 = vshll.u32 %v894_v33, 16  ;;  %v927_v40 = vshll.u32 %v882_v57, 16  ;;  %v884_v36 = vld [vmem:[#allocation2 + $0x10] sm:$0xf]  ;;  %s3196_s13 = smov 8  }
  0x89   : > { %v913_v30 = vrot.slane %v911_v11, 5  ;;  %v919_v35 = vrot.slane %v917_v21, 5  ;;  %v923_v38 = vrot.slane %v921_v32, 4  ;;  %v1020_v62 = vor.u32 %v1019_v26, %v1015_v17  ;;  %v885_v18 = vld [vmem:[#allocation2 + $0x14] sm:$0x1]  ;;  %s3197_s26 = smov 12  }
  0x8a   : > { %v1011_v39 = vrot.slane %v1010_v22, 4  ;;  %v1025_v41 = vrot.slane %v1023_v24, 5  ;;  %v941_v42 = vshll.u32 %v884_v36, 16  ;;  %v883_v44 = vld [vmem:[#allocation2 + $0xc] sm:$0xf]  ;;  %v945_v46 = vshrl.u32 %v884_v36, 16 }
  0x8b   : > { %v914_v45 = vor.u32 %v913_v30, %v910_v23  ;;  %v1021_v1 = vrot.slane %v1020_v62, 4  ;;  %v924_v20 = vor.u32 %v923_v38, %v919_v35  ;;  %v896_v47 = vld [vmem:[#allocation2 + $0x40] sm:$0xf]  ;;  %v951_v3 = vshll.u32 %v885_v18, 16  ;;  %v897_v37 = vld [vmem:[#allocation2 + $0x44] sm:$0x1] }
  0x8c   : > { %v1016_v19 = vsel %vm3611_vm11, %v1011_v39, %v1015_v17  ;;  %v943_v49 = vrot.slane %v941_v42, 5  ;;  %v932_v50 = vshrl.u32 %v883_v44, 16  ;;  %v929_v51 = vrot.slane %v927_v40, 5  ;;  %v895_v53 = vld [vmem:[#allocation2 + $0x3c] sm:$0xf]  ;;  %s3198_s27 = smov 16  }
  0x8d   : > { %1115 = vrot.lane.b32.xlu1 %v1016_v19, %s3195_s14  ;;  %v915_v43 = vrot.slane %v914_v45, 4  ;;  %v925_v48 = vrot.slane %v924_v20, 4  ;;  %v947_v52 = vrot.slane %v945_v46, 4  ;;  %v1026_v55 = vsel %vm3611_vm11, %v1021_v1, %v1025_v41  ;;  %v1165_v63 = vld [vmem:[#allocation2 + $0x4] sm:$0xf]  ;;  %s3199_s30 = smov 20  }
  0x8e   : > { %v934_v56 = vrot.slane %v932_v50, 4  ;;  %v935_v58 = vshll.u32 %v883_v44, 16  ;;  %v1037_v59 = vshll.u32 %v896_v47, 16  ;;  %v953_v60 = vrot.slane %v951_v3, 5  ;;  %v1166_v28 = vld [vmem:[#allocation2 + $0x8] sm:$0x1] }
  0x8f   : > { %v920_v34 = vsel %vm3611_vm11, %v915_v43, %v919_v35  ;;  %v948_v54 = vor.u32 %v947_v52, %v943_v49  ;;  %v1041_v61 = vshrl.u32 %v896_v47, 16  ;;  %v1047_v6 = vshll.u32 %v897_v37, 16  ;;  %v1177_v9 = vld [vmem:[#allocation2 + $0x34] sm:$0xf]  ;;  %v1164_v32 = vld [vmem:[#allocation2] sm:$0xe] }
  0x90   : > { %1099 = vrot.lane.b32.xlu0 %v920_v34, %s3195_s14  ;;  %v937_v0 = vrot.slane %v935_v58, 5  ;;  %v1039_v2 = vrot.slane %v1037_v59, 5  ;;  %v1028_v7 = vshrl.u32 %v895_v53, 16  ;;  %v930_v8 = vsel %vm3611_vm11, %v925_v48, %v929_v51  ;;  %v1178_v40 = vld [vmem:[#allocation2 + $0x38] sm:$0x1]  ;;  %s3200_s8 = smov 24  }
  0x91   : > { %1117 = vrot.lane.b32.xlu1 %v1026_v55, %s3195_s14  ;;  %v949_v10 = vrot.slane %v948_v54, 4  ;;  %v1043_v5 = vrot.slane %v1041_v61, 4  ;;  %v1031_v25 = vshll.u32 %v895_v53, 16  ;;  %v1217_v13 = vrot.slane %v1165_v63, 5  ;;  %v1168_v36 = vld [vmem:[#allocation2 + $0x10] sm:$0xf] }
  0x92   : > { %v938_v4 = vor.u32 %v937_v0, %v934_v56  ;;  %v1030_v12 = vrot.slane %v1028_v7, 4  ;;  %v1049_v16 = vrot.slane %v1047_v6, 5  ;;  %vm1213_vm13 = vcmask 1046532   ;;  %v1176_v39 = vld [vmem:[#allocation2 + $0x30] sm:$0xe]  ;;  %s3201_s9 = smov 28  }
  0x93   : > { %v954_v14 = vsel %vm3611_vm11, %v949_v10, %v953_v60  ;;  %v1044_v15 = vor.u32 %v1043_v5, %v1039_v2  ;;  %v1033_v31 = vrot.slane %v1031_v25, 5  ;;  %v1219_v11 = vrot.slane %v1217_v13, 4  ;;  %vm3634_vm14 = vmor %vm1212_vm12, %vm1213_vm13  ;;  %v1169_v42 = vld [vmem:[#allocation2 + $0x14] sm:$0x1]  ;;  %v1180_v44 = vld [vmem:[#allocation2 + $0x40] sm:$0xf] }
  0x94   : > { %1101 = vrot.lane.b32.xlu0 %v930_v8, %s3195_s14  ;;  %v939_v17 = vrot.slane %v938_v4, 4  ;;  %v1220_v21 = vrot.slane %v1166_v28, 5  ;;  %v1245_v57 = vrot.slane %v1177_v9, 5  ;;  %v2885_v35 = vrot.slane %v1164_v32, 9  ;;  %v1167_v19 = vld [vmem:[#allocation2 + $0xc] sm:$0xe] }
  0x95   : > { %1105 = vrot.lane.b32.xlu1 %v954_v14, %s3195_s14  ;;  %v1045_v27 = vrot.slane %v1044_v15, 4  ;;  %v1034_v33 = vor.u32 %v1033_v31, %v1030_v12  ;;  %v1248_v18 = vrot.slane %v1178_v40, 5  ;;  %v1224_v41 = vrot.slane %v1168_v36, 5  ;;  %v1181_v3 = vld [vmem:[#allocation2 + $0x44] sm:$0x1]  ;;  %s3202_s17 = smov 32  }
  0x96   : > { %v944_v26 = vsel %vm3611_vm11, %v939_v17, %v943_v49  ;;  %v1221_v38 = vsel %vm3634_vm14, %v1219_v11, %v1220_v21  ;;  %v1247_v62 = vrot.slane %v1245_v57, 4  ;;  %v1218_v45 = vsel %vm3634_vm14, %v2885_v35, %v1217_v13  ;;  %v1179_v52 = vld [vmem:[#allocation2 + $0x3c] sm:$0xe]  ;;  %v1434_v56 = vld [vmem:[#allocation2 + $0x10] sm:$0xf]  ;;  %s4252_s29 = scalar_lea.sflag [#allocation5], %s341_s12 }
  0x97   : > { %v1050_v22 = vsel %vm3611_vm11, %v1045_v27, %v1049_v16  ;;  %v1035_v23 = vrot.slane %v1034_v33, 4  ;;  %v2889_v1 = vrot.slane %v1176_v39, 9  ;;  %v1226_v46 = vrot.slane %v1224_v41, 4  ;;  %v1433_v54 = vld [vmem:[#allocation2 + $0xc] sm:$0xf]  ;;  %s3203_s15 = smov [#allocation4]  }
  0x98   : > { %1103 = vrot.lane.b32.xlu0 %v944_v26, %s3195_s14  ;;  %v1249_v20 = vsel %vm3634_vm14, %v1247_v62, %v1248_v18  ;;  %v1227_v47 = vrot.slane %v1169_v42, 5  ;;  %v1252_v49 = vrot.slane %v1180_v44, 5  ;;  %v2886_v37 = vrot.slane %v1167_v19, 9  ;;  %v1337_v61 = vld [vmem:[#allocation2 + $0x10] sm:$0xf] }
  0x99   : > { %1121 = vrot.lane.b32.xlu1 %v1050_v22, %s3195_s14  ;;  %v1040_v30 = vsel %vm3611_vm11, %v1035_v23, %v1039_v2  ;;  %v1246_v50 = vsel %vm3634_vm14, %v2889_v1, %v1245_v57  ;;  %v1255_v51 = vrot.slane %v1181_v3, 5  ;;  %v2890_v55 = vrot.slane %v1179_v52, 9  ;;  %v1446_v63 = vld [vmem:[#allocation2 + $0x40] sm:$0xf]  ;;  %v1435_v2 = vld [vmem:[#allocation2 + $0x14] sm:$0x1] }
  0x9a   : > { %v1228_v43 = vsel %vm3634_vm14, %v1226_v46, %v1227_v47  ;;  %v1254_v48 = vrot.slane %v1252_v49, 4  ;;  %v1225_v53 = vsel %vm3634_vm14, %v2886_v37, %v1224_v41  ;;  %v1467_v59 = vshll.u32 %v1434_v56, 16  ;;  %v1336_v10 = vld [vmem:[#allocation2 + $0xc] sm:$0xf]  ;;  %v1445_v4 = vld [vmem:[#allocation2 + $0x3c] sm:$0xf] }
  0x9b   : > { %v1471_v34 = vshrl.u32 %v1434_v56, 16  ;;  %v1253_v60 = vsel %vm3634_vm14, %v2890_v55, %v1252_v49  ;;  %v1458_v0 = vshrl.u32 %v1433_v54, 16  ;;  %v1461_v8 = vshll.u32 %v1433_v54, 16  ;;  %v1345_v12 = vld [vmem:[#allocation2 + $0x40] sm:$0xf] }
  0x9c   : > { %1119 = vrot.lane.b32.xlu0 %v1040_v30, %s3195_s14  ;;  %v1256_v58 = vsel %vm3634_vm14, %v1254_v48, %v1255_v51  ;;  %v3667_v6 = vrot.slane %v1467_v59, 5  ;;  %v1563_v5 = vshll.u32 %v1446_v63, 16  ;;  %v1567_v25 = vshrl.u32 %v1446_v63, 16  ;;  %v1437_v15 = vld [vmem:[#allocation2 + $0x1c] sm:$0xf] }
  0x9d   : > { %1273 = vrot.lane.b32.xlu1 %v1221_v38, %s3196_s13  ;;  %v1473_v7 = vrot.slane %v1471_v34, 4  ;;  %v1477_v13 = vshll.u32 %v1435_v2, 16  ;;  %v1460_v14 = vrot.slane %v1458_v0, 4  ;;  %v1463_v31 = vrot.slane %v1461_v8, 5  ;;  %v1447_v28 = vld [vmem:[#allocation2 + $0x44] sm:$0x1] }
  0x9e   : > { %v1554_v9 = vshrl.u32 %v1445_v4, 16  ;;  %v1557_v17 = vshll.u32 %v1445_v4, 16  ;;  %v1344_v27 = vld [vmem:[#allocation2 + $0x3c] sm:$0xf]  ;;  %v3673_v33 = vrot.slane %v1563_v5, 5  ;;  %v1569_v26 = vrot.slane %v1567_v25, 4 }
  0x9f   : > { %v1474_v16 = vor.u32 %v1473_v7, %v3667_v6  ;;  %v1339_v11 = vld [vmem:[#allocation2 + $0x1c] sm:$0xf]  ;;  %v1491_v21 = vshll.u32 %v1437_v15, 16  ;;  %v1495_v32 = vshrl.u32 %v1437_v15, 16  ;;  %v1436_v57 = vld [vmem:[#allocation2 + $0x18] sm:$0xf]  ;;  %v1464_v35 = vor.u32 %v1463_v31, %v1460_v14 }
  0xa0   : > { %1271 = vrot.lane.b32.xlu0 %v1218_v45, %s3196_s13  ;;  %v1479_v22 = vrot.slane %v1477_v13, 5  ;;  %v1573_v23 = vshll.u32 %v1447_v28, 16  ;;  %v1449_v40 = vld [vmem:[#allocation2 + $0x4c] sm:$0xf]  ;;  %v1338_v36 = vld [vmem:[#allocation2 + $0x18] sm:$0xf]  ;;  %v1570_v39 = vor.u32 %v1569_v26, %v3673_v33 }
  0xa1   : > { %1289 = vrot.lane.b32.xlu1 %v1249_v20, %s3196_s13  ;;  %v1475_v30 = vrot.slane %v1474_v16, 4  ;;  %v1556_v38 = vrot.slane %v1554_v9, 4  ;;  %v1559_v62 = vrot.slane %v1557_v17, 5  ;;  %v1347_v18 = vld [vmem:[#allocation2 + $0x4c] sm:$0xf]  ;;  %v1482_v42 = vshrl.u32 %v1436_v57, 16 }
  0xa2   : > { %v1438_v41 = vld [vmem:[#allocation2 + $0x20] sm:$0x1]  ;;  %v1485_v44 = vshll.u32 %v1436_v57, 16  ;;  %v3678_v45 = vrot.slane %v1491_v21, 5  ;;  %v1497_v1 = vrot.slane %v1495_v32, 4  ;;  %v1587_v20 = vshll.u32 %v1449_v40, 16 }
  0xa3   : > { %v1591_v46 = vshrl.u32 %v1449_v40, 16  ;;  %v1448_v47 = vld [vmem:[#allocation2 + $0x48] sm:$0xf]  ;;  %v1575_v19 = vrot.slane %v1573_v23, 5  ;;  %v1480_v49 = vsel %vm3611_vm11, %v1475_v30, %v1479_v22  ;;  %v1465_v3 = vrot.slane %v1464_v35, 4 }
  0xa4   : > { %1287 = vrot.lane.b32.xlu0 %v1246_v50, %s3196_s13  ;;  %v1560_v50 = vor.u32 %v1559_v62, %v1556_v38  ;;  %v1501_v37 = vshll.u32 %v1438_v41, 16  ;;  %v1484_v48 = vrot.slane %v1482_v42, 4  ;;  %v1487_v51 = vrot.slane %v1485_v44, 5  ;;  %v1450_v34 = vld [vmem:[#allocation2 + $0x50] sm:$0x1] }
  0xa5   : > { %1277 = vrot.lane.b32.xlu1 %v1228_v43, %s3196_s13  ;;  %v1346_v43 = vld [vmem:[#allocation2 + $0x48] sm:$0xf]  ;;  %v1578_v52 = vshrl.u32 %v1448_v47, 16  ;;  %v1571_v55 = vrot.slane %v1570_v39, 4  ;;  %v1498_v56 = vor.u32 %v1497_v1, %v3678_v45  ;;  %v1593_v59 = vrot.slane %v1591_v46, 4 }
  0xa6   : > { %v1470_v54 = vsel %vm3611_vm11, %v1465_v3, %v3667_v6  ;;  %v1488_v63 = vor.u32 %v1487_v51, %v1484_v48  ;;  %v1597_v5 = vshll.u32 %v1450_v34, 16  ;;  %v1715_v25 = vld [vmem:[#allocation2 + $0x10] sm:$0xf]  ;;  %v848_v6 = vld [vmem:[#allocation2] sm:$0xf]  ;;  %vm1147_vm15 = vcmask 60448  }
  0xa7   : > { %v1580_v0 = vrot.slane %v1578_v52, 4  ;;  %v1576_v7 = vsel %vm3611_vm11, %v1571_v55, %v1575_v19  ;;  %v1499_v8 = vrot.slane %v1498_v56, 4  ;;  %v856_v4 = vld [vmem:[#allocation2 + $0x30] sm:$0xf]  ;;  %864 = vst.msk [vmem:[#allocation3] sm:$0xf] %vm623_vm1, %v848_v6 }
  0xa8   : > { %1275 = vrot.lane.b32.xlu0 %v1225_v53, %s3196_s13  ;;  %v1581_v53 = vshll.u32 %v1448_v47, 16  ;;  %872 = vst.msk [vmem:[#allocation3 + $0x20] sm:$0xf] %vm623_vm1, %v856_v4  ;;  %v1489_v13 = vrot.slane %v1488_v63, 4  ;;  %v1599_v31 = vrot.slane %v1597_v5, 5  ;;  %v1764_v28 = vrot.slane %v1715_v25, 5 }
  0xa9   : > { %1293 = vrot.lane.b32.xlu1 %v1256_v58, %s3196_s13  ;;  %v3685_v58 = vrot.slane %v1587_v20, 5  ;;  %v1716_v9 = vld [vmem:[#allocation2 + $0x14] sm:$0x1]  ;;  %v1727_v17 = vld [vmem:[#allocation2 + $0x40] sm:$0xf]  ;;  %vm2543_vm0 = vcmask 1041408  }
  0xaa   : > { %v1583_v2 = vrot.slane %v1581_v53, 5  ;;  %v1766_v32 = vrot.slane %v1764_v28, 4  ;;  %v1767_v57 = vrot.slane %v1716_v9, 5  ;;  %v1714_v22 = vld [vmem:[#allocation2 + $0xc] sm:$0xe]  ;;  %v1792_v23 = vrot.slane %v1727_v17, 5 }
  0xab   : > { %v1728_v40 = vld [vmem:[#allocation2 + $0x44] sm:$0x1]  ;;  %v851_v30 = vld [vmem:[#allocation2 + $0x10] sm:$0xf]  ;;  %v850_v35 = vld [vmem:[#allocation2 + $0xc] sm:$0xf] }
  0xac   : > { %1291 = vrot.lane.b32.xlu0 %v1253_v60, %s3196_s13  ;;  %v1503_v60 = vrot.slane %v1501_v37, 5  ;;  %v1584_v14 = vor.u32 %v1583_v2, %v1580_v0  ;;  %867 = vst.msk [vmem:[#allocation3 + $0xc] sm:$0xf] %vm623_vm1, %v851_v30  ;;  %v2893_v62 = vrot.slane %v1714_v22, 9  ;;  %866 = vst.msk [vmem:[#allocation3 + $0x8] sm:$0xf] %vm623_vm1, %v850_v35 }
  0xad   : > { %1370 = vrot.lane.b32.xlu1 %v1337_v61, %s3197_s26  ;;  %v1561_v61 = vrot.slane %v1560_v50, 4  ;;  %v1794_v39 = vrot.slane %v1792_v23, 4  ;;  %v1795_v41 = vrot.slane %v1728_v40, 5  ;;  %v1726_v42 = vld [vmem:[#allocation2 + $0x3c] sm:$0xe]  ;;  %vm1319_vm2 = vcmask 93248  }
  0xae   : > { %v1504_v15 = vsel %vm3611_vm11, %v1499_v8, %v1503_v60  ;;  %v1585_v26 = vrot.slane %v1584_v14, 4  ;;  %v1730_v1 = vld [vmem:[#allocation2 + $0x4c] sm:$0xf]  ;;  %v859_v20 = vld [vmem:[#allocation2 + $0x40] sm:$0xf]  ;;  %v1765_v47 = vsel %vm3634_vm14, %v2893_v62, %v1764_v28  ;;  %v2897_v19 = vrot.slane %v1726_v42, 9 }
  0xaf   : > { %875 = vst.msk [vmem:[#allocation3 + $0x2c] sm:$0xf] %vm623_vm1, %v859_v20  ;;  %v858_v46 = vld [vmem:[#allocation2 + $0x3c] sm:$0xf]  ;;  %v1717_v37 = vld [vmem:[#allocation2 + $0x18] sm:$0xe] }
  0xb0   : > { %1368 = vrot.lane.b32.xlu0 %v1336_v10, %s3197_s26  ;;  %v1594_v10 = vor.u32 %v1593_v59, %v3685_v58  ;;  %v1590_v38 = vsel %vm3611_vm11, %v1585_v26, %v3685_v58  ;;  %874 = vst.msk [vmem:[#allocation3 + $0x28] sm:$0xf] %vm623_vm1, %v858_v46  ;;  %v1731_v48 = vld [vmem:[#allocation2 + $0x50] sm:$0x1]  ;;  %v1793_v51 = vsel %vm3634_vm14, %v2897_v19, %v1792_v23  ;;  %v2894_v52 = vrot.slane %v1717_v37, 9 }
  0xb1   : > { %1386 = vrot.lane.b32.xlu1 %v1345_v12, %s3197_s26  ;;  %v1566_v12 = vsel %vm3611_vm11, %v1561_v61, %v3673_v33  ;;  %v1494_v33 = vsel %vm3611_vm11, %v1489_v13, %v3678_v45  ;;  %v1719_v45 = vld [vmem:[#allocation2 + $0x20] sm:$0x1]  ;;  %v1802_v56 = vrot.slane %v1731_v48, 5  ;;  %v1729_v58 = vld [vmem:[#allocation2 + $0x48] sm:$0xe]  ;;  %vm1697_vm3 = vcmask 158848  }
  0xb2   : > { %v1595_v16 = vrot.slane %v1594_v10, 4  ;;  %v1774_v50 = vrot.slane %v1719_v45, 5  ;;  %v2898_v34 = vrot.slane %v1729_v58, 9  ;;  %v1982_v60 = vld [vmem:[#allocation2 + $0x1c] sm:$0xf]  ;;  %vm1866_vm4 = vcmask 191648  }
  0xb3   : > { %v2015_v63 = vshll.u32 %v1982_v60, 16  ;;  %v2019_v0 = vshrl.u32 %v1982_v60, 16  ;;  %v1981_v2 = vld [vmem:[#allocation2 + $0x18] sm:$0xf]  ;;  %v1994_v8 = vld [vmem:[#allocation2 + $0x4c] sm:$0xf] }
  0xb4   : > { %1384 = vrot.lane.b32.xlu0 %v1344_v27, %s3197_s26  ;;  %v857_v27 = vld [vmem:[#allocation2 + $0x34] sm:$0xf]  ;;  %v1600_v21 = vsel %vm3611_vm11, %v1595_v16, %v1599_v31  ;;  %v2006_v10 = vshrl.u32 %v1981_v2, 16  ;;  %v2009_v5 = vshll.u32 %v1981_v2, 16  ;;  %v1884_v25 = vld [vmem:[#allocation2 + $0x18] sm:$0xf] }
  0xb5   : > { %1374 = vrot.lane.b32.xlu1 %v1339_v11, %s3197_s26  ;;  %873 = vst.msk [vmem:[#allocation3 + $0x24] sm:$0xf] %vm623_vm1, %v857_v27  ;;  %v849_v11 = vld [vmem:[#allocation2 + $0x4] sm:$0xf]  ;;  %v1983_v4 = vld [vmem:[#allocation2 + $0x20] sm:$0x1] }
  0xb6   : > { %865 = vst.msk [vmem:[#allocation3 + $0x4] sm:$0xf] %vm623_vm1, %v849_v11  ;;  %v3748_v6 = vrot.slane %v2015_v63, 5  ;;  %v1893_v13 = vld [vmem:[#allocation2 + $0x4c] sm:$0xf]  ;;  %v2111_v14 = vshll.u32 %v1994_v8, 16 }
  0xb7   : > { %v1993_v16 = vld [vmem:[#allocation2 + $0x48] sm:$0xf]  ;;  %v2025_v9 = vshll.u32 %v1983_v4, 16  ;;  %v2008_v17 = vrot.slane %v2006_v10, 4  ;;  %v2011_v27 = vrot.slane %v2009_v5, 5  ;;  %vm1964_vm5 = vcmask 224448  }
  0xb8   : > { %1372 = vrot.lane.b32.xlu0 %v1338_v36, %s3197_s26  ;;  %v1718_v36 = vld [vmem:[#allocation2 + $0x1c] sm:$0xf]  ;;  %v1892_v31 = vld [vmem:[#allocation2 + $0x48] sm:$0xf]  ;;  %v3753_v22 = vrot.slane %v2111_v14, 5  ;;  %vm2245_vm6 = vcmask 257248  }
  0xb9   : > { %1390 = vrot.lane.b32.xlu1 %v1347_v18, %s3197_s26  ;;  %v1768_v18 = vsel %vm3634_vm14, %v1766_v32, %v1767_v57  ;;  %v1771_v44 = vrot.slane %v1718_v36, 5  ;;  %v1985_v28 = vld [vmem:[#allocation2 + $0x28] sm:$0xf]  ;;  %v2105_v32 = vshll.u32 %v1993_v16, 16  ;;  %v1984_v57 = vld [vmem:[#allocation2 + $0x24] sm:$0xf] }
  0xba   : > { %v1887_v26 = vld [vmem:[#allocation2 + $0x28] sm:$0xf]  ;;  %v2039_v40 = vshll.u32 %v1985_v28, 16  ;;  %v2043_v36 = vshrl.u32 %v1985_v28, 16  ;;  %v1997_v30 = vld [vmem:[#allocation2 + $0x58] sm:$0xf] }
  0xbb   : > { %v1773_v3 = vrot.slane %v1771_v44, 4  ;;  %v1772_v59 = vsel %vm3634_vm14, %v2894_v52, %v1771_v44  ;;  %v2027_v62 = vrot.slane %v2025_v9, 5  ;;  %v2107_v44 = vrot.slane %v2105_v32, 5  ;;  %v1996_v20 = vld [vmem:[#allocation2 + $0x54] sm:$0xf] }
  0xbc   : > { %1388 = vrot.lane.b32.xlu0 %v1346_v43, %s3197_s26  ;;  %v1799_v43 = vrot.slane %v1730_v1, 5  ;;  %v2135_v45 = vshll.u32 %v1997_v30, 16  ;;  %v2139_v1 = vshrl.u32 %v1997_v30, 16  ;;  %v1895_v46 = vld [vmem:[#allocation2 + $0x58] sm:$0xf]  ;;  %v2129_v52 = vshll.u32 %v1996_v20, 16 }
  0xbd   : > { %1651 = vrot.lane.b32.xlu1 %v1480_v49, %s3198_s27  ;;  %v1796_v49 = vsel %vm3634_vm14, %v1794_v39, %v1795_v41  ;;  %v1775_v53 = vsel %vm3634_vm14, %v1773_v3, %v1774_v50  ;;  %v2030_v39 = vshrl.u32 %v1984_v57, 16  ;;  %v2033_v41 = vshll.u32 %v1984_v57, 16  ;;  %v1986_v37 = vld [vmem:[#allocation2 + $0x2c] sm:$0x1]  ;;  %v1998_v63 = vld [vmem:[#allocation2 + $0x5c] sm:$0x1] }
  0xbe   : > { %v1801_v55 = vrot.slane %v1799_v43, 4  ;;  %v1800_v61 = vsel %vm3634_vm14, %v2898_v34, %v1799_v43  ;;  %v2045_v3 = vrot.slane %v2043_v36, 4  ;;  %v3762_v58 = vrot.slane %v2135_v45, 5  ;;  %v3773_v4 = vld [vmem:[#allocation2 + $0x1c] sm:$0xf] }
  0xbf   : > { %v2032_v43 = vrot.slane %v2030_v39, 4  ;;  %v2035_v48 = vrot.slane %v2033_v41, 5  ;;  %v2312_v28 = vrot.slane %v3773_v4, 5  ;;  %v899_v32 = vld [vmem:[#allocation2 + $0x4c] sm:$0xf]  ;;  %vm2414_vm7 = vcmask 290048  }
  0xc0   : > { %1649 = vrot.lane.b32.xlu0 %v1470_v54, %s3198_s27  ;;  %v1803_v54 = vsel %vm3634_vm14, %v1801_v55, %v1802_v56  ;;  %v2262_v57 = vld [vmem:[#allocation2 + $0x18] sm:$0xe]  ;;  %v1065_v39 = vshrl.u32 %v899_v32, 16  ;;  %v898_v41 = vld [vmem:[#allocation2 + $0x48] sm:$0xf]  ;;  %vm2518_vm8 = vcmask 293888  }
  0xc1   : > { %1667 = vrot.lane.b32.xlu1 %v1576_v7, %s3198_s27  ;;  %v1885_v7 = vld [vmem:[#allocation2 + $0x1c] sm:$0xf] }
  0xc4   : > { %1665 = vrot.lane.b32.xlu0 %v1566_v12, %s3198_s27  ;;  %v2021_v12 = vrot.slane %v2019_v0, 4  ;;  %v2036_v0 = vor.u32 %v2035_v48, %v2032_v43  ;;  %v900_v43 = vld [vmem:[#allocation2 + $0x50] sm:$0x1] }
  0xc5   : > { %1655 = vrot.lane.b32.xlu1 %v1504_v15, %s3198_s27  ;;  %v2115_v15 = vshrl.u32 %v1994_v8, 16 }
  0xc6   : > { %v2022_v11 = vor.u32 %v2021_v12, %v3748_v6 }
  0xc7   : > { %v2117_v23 = vrot.slane %v2115_v15, 4  ;;  %v887_v15 = vld [vmem:[#allocation2 + $0x1c] sm:$0xf] }
  0xc8   : > { %1653 = vrot.lane.b32.xlu0 %v1494_v33, %s3198_s27  ;;  %v1995_v33 = vld [vmem:[#allocation2 + $0x50] sm:$0x1] }
  0xc9   : > { %1671 = vrot.lane.b32.xlu1 %v1600_v21, %s3198_s27  ;;  %v2102_v21 = vshrl.u32 %v1993_v16, 16  ;;  %v2121_v35 = vshll.u32 %v1995_v33, 16  ;;  %v2118_v19 = vor.u32 %v2117_v23, %v3753_v22  ;;  %v2037_v16 = vrot.slane %v2036_v0, 4  ;;  %v2275_v23 = vld [vmem:[#allocation2 + $0x4c] sm:$0xf] }
  0xcb   : > { %v2104_v42 = vrot.slane %v2102_v21, 4  ;;  %v2123_v50 = vrot.slane %v2121_v35, 5  ;;  %v886_v21 = vld [vmem:[#allocation2 + $0x18] sm:$0xf]  ;;  %v2276_v35 = vld [vmem:[#allocation2 + $0x50] sm:$0x1] }
  0xcc   : > { %1669 = vrot.lane.b32.xlu0 %v1590_v38, %s3198_s27  ;;  %v1886_v38 = vld [vmem:[#allocation2 + $0x24] sm:$0xf] }
  0xcd   : > { %1820 = vrot.lane.b32.xlu1 %v1768_v18, %s3199_s30  ;;  %v2012_v18 = vor.u32 %v2011_v27, %v2008_v17  ;;  %v2108_v56 = vor.u32 %v2107_v44, %v2104_v42  ;;  %v2264_v27 = vld [vmem:[#allocation2 + $0x20] sm:$0x1]  ;;  %v2340_v44 = vrot.slane %v2275_v23, 5 }
  0xce   : > { %v2315_v30 = vrot.slane %v2264_v27, 5 }
  0xcf   : > { %v2013_v55 = vrot.slane %v2012_v18, 4  ;;  %v2109_v10 = vrot.slane %v2108_v56, 4  ;;  %v1061_v18 = vshll.u32 %v899_v32, 16  ;;  %v902_v32 = vld [vmem:[#allocation2 + $0x58] sm:$0xf] }
  0xd0   : > { %1818 = vrot.lane.b32.xlu0 %v1765_v47, %s3199_s30  ;;  %v2023_v47 = vrot.slane %v2022_v11, 4  ;;  %v969_v11 = vshrl.u32 %v887_v15, 16 }
  0xd1   : > { %1836 = vrot.lane.b32.xlu1 %v1796_v49, %s3199_s30  ;;  %v3758_v49 = vrot.slane %v2039_v40, 5  ;;  %v2018_v8 = vsel %vm3611_vm11, %v2013_v55, %v3748_v6  ;;  %v2114_v6 = vsel %vm3611_vm11, %v2109_v10, %v3753_v22  ;;  %v2314_v22 = vrot.slane %v2312_v28, 4  ;;  %v2274_v55 = vld [vmem:[#allocation2 + $0x48] sm:$0xe] }
  0xd2   : > { %v2028_v34 = vsel %vm3611_vm11, %v2023_v47, %v2027_v62  ;;  %v959_v62 = vshll.u32 %v886_v21, 16  ;;  %v3799_v48 = vrot.slane %v1061_v18, 5 }
  0xd3   : > { %v2046_v60 = vor.u32 %v2045_v3, %v3758_v49  ;;  %v2042_v40 = vsel %vm3611_vm11, %v2037_v16, %v3758_v49  ;;  %v1052_v49 = vshrl.u32 %v898_v41, 16  ;;  %v1055_v3 = vshll.u32 %v898_v41, 16  ;;  %v901_v41 = vld [vmem:[#allocation2 + $0x54] sm:$0xf] }
  0xd4   : > { %1834 = vrot.lane.b32.xlu0 %v1793_v51, %s3199_s30  ;;  %v2126_v51 = vshrl.u32 %v1996_v20, 16  ;;  %v2901_v20 = vrot.slane %v2262_v57, 9  ;;  %v852_v57 = vld [vmem:[#allocation2 + $0x18] sm:$0xf] }
  0xd5   : > { %1824 = vrot.lane.b32.xlu1 %v1775_v53, %s3199_s30  ;;  %v1894_v53 = vld [vmem:[#allocation2 + $0x54] sm:$0xf]  ;;  %868 = vst.msk [vmem:[#allocation3 + $0x10] sm:$0xf] %vm623_vm1, %v852_v57 }
  0xd6   : > { %v2128_v2 = vrot.slane %v2126_v51, 4  ;;  %v1067_v51 = vrot.slane %v1065_v39, 4 }
  0xd8   : > { %1822 = vrot.lane.b32.xlu0 %v1772_v59, %s3199_s30  ;;  %v2141_v59 = vrot.slane %v2139_v1, 4  ;;  %v971_v1 = vrot.slane %v969_v11, 4  ;;  %v1068_v0 = vor.u32 %v1067_v51, %v3799_v48  ;;  %v2277_v51 = vld [vmem:[#allocation2 + $0x54] sm:$0xe] }
  0xd9   : > { %1840 = vrot.lane.b32.xlu1 %v1803_v54, %s3199_s30  ;;  %v2119_v54 = vrot.slane %v2118_v19, 4  ;;  %v2343_v19 = vrot.slane %v2276_v35, 5 }
  0xda   : > { %v2142_v5 = vor.u32 %v2141_v59, %v3762_v58  ;;  %v1069_v16 = vrot.slane %v1068_v0, 4  ;;  %v3091_v0 = vld [vmem:[%s4307_s3 + $0x8] sm:$0xff]  }
  0xdb   : > { %v2124_v12 = vsel %vm3611_vm11, %v2119_v54, %v2123_v50  ;;  %v1057_v54 = vrot.slane %v1055_v3, 5 }
  0xdc   : > { %1838 = vrot.lane.b32.xlu0 %v1800_v61, %s3199_s30  ;;  %v2049_v61 = vshll.u32 %v1986_v37, 16  ;;  %v2143_v9 = vrot.slane %v2142_v5, 4  ;;  %v961_v37 = vrot.slane %v959_v62, 5  ;;  %v891_v62 = vld [vmem:[#allocation2 + $0x2c] sm:$0x1] }
  0xdd   : > { %1918 = vrot.lane.b32.xlu1 %v1885_v7, %s3200_s8  ;;  %v2131_v7 = vrot.slane %v2129_v52, 5  ;;  %v2316_v52 = vsel %vm3634_vm14, %v2314_v22, %v2315_v30  ;;  %v2279_v22 = vld [vmem:[#allocation2 + $0x5c] sm:$0x1] }
  0xde   : > { %v2051_v14 = vrot.slane %v2049_v61, 5  ;;  %v2905_v61 = vrot.slane %v2274_v55, 9  ;;  %v1076_v55 = vshrl.u32 %v901_v41, 16 }
  0xe0   : > { %1916 = vrot.lane.b32.xlu0 %v1884_v25, %s3200_s8  ;;  %v2145_v25 = vshll.u32 %v1998_v63, 16 }
  0xe1   : > { %1934 = vrot.lane.b32.xlu1 %v1893_v13, %s3200_s8  ;;  %v2047_v13 = vrot.slane %v2046_v60, 4  ;;  %v2313_v60 = vsel %vm3634_vm14, %v2901_v20, %v2312_v28  ;;  %v3819_v28 = vld [vmem:[#allocation2 + $0x58] sm:$0xf]  ;;  %v1085_v20 = vshll.u32 %v902_v32, 16 }
  0xe2   : > { %v2147_v17 = vrot.slane %v2145_v25, 5  ;;  %v890_v25 = vld [vmem:[#allocation2 + $0x28] sm:$0xf]  ;;  %v2347_v30 = vrot.slane %v3819_v28, 5 }
  0xe3   : > { %v2052_v33 = vsel %vm3611_vm11, %v2047_v13, %v2051_v14  ;;  %v2341_v14 = vsel %vm3634_vm14, %v2905_v61, %v2340_v44  ;;  %v993_v27 = vshrl.u32 %v890_v25, 16 }
  0xe4   : > { %1932 = vrot.lane.b32.xlu0 %v1892_v31, %s3200_s8  ;;  %v2132_v31 = vor.u32 %v2131_v7, %v2128_v2  ;;  %v2148_v42 = vsel %vm3611_vm11, %v2143_v9, %v2147_v17  ;;  %v3809_v2 = vld [vmem:[#allocation2 + $0x28] sm:$0xf]  ;;  %v989_v17 = vshll.u32 %v890_v25, 16  ;;  %v1078_v25 = vrot.slane %v1076_v55, 4  ;;  %v1186_v55 = vld [vmem:[#allocation2 + $0x58] sm:$0xf] }
  0xe5   : > { %1922 = vrot.lane.b32.xlu1 %v1887_v26, %s3200_s8  ;;  %v965_v26 = vshll.u32 %v887_v15, 16  ;;  %v2319_v13 = vrot.slane %v3809_v2, 5 }
  0xe6   : > { %v2133_v36 = vrot.slane %v2132_v31, 4  ;;  %v2267_v31 = vld [vmem:[#allocation2 + $0x2c] sm:$0x1] }
  0xe7   : > { %v3792_v45 = vrot.slane %v965_v26, 5  ;;  %v853_v26 = vld [vmem:[#allocation2 + $0x1c] sm:$0xf] }
  0xe8   : > { %1920 = vrot.lane.b32.xlu0 %v1886_v38, %s3200_s8  ;;  %v956_v38 = vshrl.u32 %v886_v21, 16  ;;  %v2138_v47 = vsel %vm3611_vm11, %v2133_v36, %v3762_v58  ;;  %v1071_v58 = vshll.u32 %v900_v43, 16  ;;  %v2265_v21 = vld [vmem:[#allocation2 + $0x24] sm:$0xe]  ;;  %869 = vst.msk [vmem:[#allocation3 + $0x14] sm:$0xf] %vm623_vm1, %v853_v26 }
  0xe9   : > { %1938 = vrot.lane.b32.xlu1 %v1895_v46, %s3200_s8  ;;  %v888_v46 = vld [vmem:[#allocation2 + $0x20] sm:$0x1]  ;;  %v972_v56 = vor.u32 %v971_v1, %v3792_v45  ;;  %v2322_v36 = vrot.slane %v2267_v31, 5  ;;  %v995_v1 = vrot.slane %v993_v27, 4  ;;  %v999_v43 = vshll.u32 %v891_v62, 16 }
  0xea   : > { %v958_v50 = vrot.slane %v956_v38, 4  ;;  %v975_v59 = vshll.u32 %v888_v46, 16  ;;  %v1073_v4 = vrot.slane %v1071_v58, 5  ;;  %v1089_v46 = vshrl.u32 %v902_v32, 16  ;;  %v855_v26 = vld [vmem:[#allocation2 + $0x28] sm:$0xf] }
  0xeb   : > { %v1001_v2 = vrot.slane %v999_v43, 5  ;;  %871 = vst.msk [vmem:[#allocation3 + $0x1c] sm:$0xf] %vm623_vm1, %v855_v26  ;;  %v1182_v43 = vld [vmem:[#allocation2 + $0x48] sm:$0xe] }
  0xec   : > { %1936 = vrot.lane.b32.xlu0 %v1894_v53, %s3200_s8  ;;  %v2342_v53 = vrot.slane %v2340_v44, 4  ;;  %v962_v63 = vor.u32 %v961_v37, %v958_v50  ;;  %v977_v10 = vrot.slane %v975_v59, 5  ;;  %v1074_v38 = vsel %vm3611_vm11, %v1069_v16, %v1073_v4 }
  0xed   : > { %2199 = vrot.lane.b32.xlu1 %v2028_v34, %s3201_s9  ;;  %v1054_v34 = vrot.slane %v1052_v49, 4  ;;  %v3837_v44 = vrot.slane %v989_v17, 5  ;;  %v2902_v49 = vrot.slane %v2265_v21, 9  ;;  %v2349_v50 = vrot.slane %v2347_v30, 4 }
  0xee   : > { %v2344_v7 = vsel %vm3634_vm14, %v2342_v53, %v2343_v19  ;;  %v963_v15 = vrot.slane %v962_v63, 4  ;;  %v2350_v37 = vrot.slane %v2279_v22, 5  ;;  %v3089_v63 = vld [vmem:[%s4307_s3 + $0x10] ss:$0 sps:$4 sm:$0x33]  }
  0xef   : > { %3004 = vmatprep.subr.msk.bf16.mxu0 %vm2543_vm0, %v3089_v63  ;;  %3005 = vmatprep.subr.msk.bf16.mxu1 %vm2543_vm0, %v3089_v63  ;;  %v1183_v22 = vld [vmem:[#allocation2 + $0x4c] sm:$0xf] }
  0xf0   : > { %2197 = vrot.lane.b32.xlu0 %v2018_v8, %s3201_s9  ;;  %v973_v8 = vrot.slane %v972_v56, 4  ;;  %v968_v35 = vsel %vm3611_vm11, %v963_v15, %v3792_v45  ;;  %v860_v45 = vld [vmem:[#allocation2 + $0x48] sm:$0xf]  ;;  %v1079_v56 = vshll.u32 %v901_v41, 16 }
  0xf1   : > { %2215 = vrot.lane.b32.xlu1 %v2124_v12, %s3201_s9  ;;  %v1058_v12 = vor.u32 %v1057_v54, %v1054_v34  ;;  %876 = vst.msk [vmem:[#allocation3 + $0x30] sm:$0xf] %vm623_vm1, %v860_v45  ;;  %v903_v34 = vld [vmem:[#allocation2 + $0x5c] sm:$0x1]  ;;  %v3853_v54 = vrot.slane %v1085_v20, 5  ;;  %v1259_v20 = vrot.slane %v1183_v22, 5 }
  0xf2   : > { %v978_v9 = vsel %vm3611_vm11, %v973_v8, %v977_v10  ;;  %v2351_v8 = vsel %vm3634_vm14, %v2349_v50, %v2350_v37  ;;  %v2906_v10 = vrot.slane %v2277_v51, 9  ;;  %v1081_v4 = vrot.slane %v1079_v56, 5  ;;  %v1340_v22 = vld [vmem:[#allocation2 + $0x24] sm:$0xf] }
  0xf3   : > { %v1059_v23 = vrot.slane %v1058_v12, 4  ;;  %v2545_v12 = vsel %vm2543_vm0, %v3089_v63, 0  ;;  %v1261_v50 = vrot.slane %v1259_v20, 4 }
  0xf4   : > { %2213 = vrot.lane.b32.xlu0 %v2114_v6, %s3201_s9  ;;  %2977 = vmatpush3.bf16.msra.mxu0 %v2545_v12  ;;  %v2348_v17 = vsel %vm3634_vm14, %v2906_v10, %v2347_v30  ;;  %v863_v30 = vld [vmem:[#allocation2 + $0x58] sm:$0xf] }
  0xf5   : > { %2203 = vrot.lane.b32.xlu1 %v2052_v33, %s3201_s9  ;;  %v889_v33 = vld [vmem:[#allocation2 + $0x24] sm:$0xf]  ;;  %v1064_v3 = vsel %vm3611_vm11, %v1059_v23, %v3799_v48  ;;  %v996_v48 = vor.u32 %v995_v1, %v3837_v44  ;;  %2978 = vmatprep.subr.bf16.mxu0 %v3091_v0  ;;  %879 = vst.msk [vmem:[#allocation3 + $0x3c] sm:$0xf] %vm623_vm1, %v863_v30  ;;  %v1170_v1 = vld [vmem:[#allocation2 + $0x18] sm:$0xe] }
  0xf6   : > { %v980_v18 = vshrl.u32 %v889_v33, 16  ;;  %v983_v39 = vshll.u32 %v889_v33, 16  ;;  %3001 = vmatpush3.bf16.msra.mxu1 %v2545_v12  ;;  %v1082_v33 = vor.u32 %v1081_v4, %v1078_v25  ;;  %v1185_v12 = vld [vmem:[#allocation2 + $0x54] sm:$0xe] }
  0xf7   : > { %v997_v15 = vrot.slane %v996_v48, 4  ;;  %2999 = vmatprep.subr.bf16.mxu1 %v3091_v0 }
  0xf8   : > { %2201 = vrot.lane.b32.xlu0 %v2042_v40, %s3201_s9  ;;  %v2321_v40 = vrot.slane %v2319_v13, 4  ;;  %v985_v53 = vrot.slane %v983_v39, 5  ;;  %2979 = vmatpush3.bf16.msra.mxu0 %v3091_v0  ;;  %v1083_v62 = vrot.slane %v1082_v33, 4 }
  0xf9   : > { %2219 = vrot.lane.b32.xlu1 %v2148_v42, %s3201_s9  ;;  %v1002_v21 = vsel %vm3611_vm11, %v997_v15, %v1001_v2  ;;  %v2892_v2 = vrot.slane %v1185_v12, 9 }
  0xfa   : > { %v2323_v58 = vsel %vm3634_vm14, %v2321_v40, %v2322_v36  ;;  %v854_v40 = vld [vmem:[#allocation2 + $0x24] sm:$0xf]  ;;  %v1172_v36 = vld [vmem:[#allocation2 + $0x20] sm:$0x1]  ;;  %3002 = vmatpush3.bf16.msra.mxu1 %v3091_v0  ;;  %v1187_v0 = vld [vmem:[#allocation2 + $0x5c] sm:$0x1] }
  0xfb   : > { %870 = vst.msk [vmem:[#allocation3 + $0x18] sm:$0xf] %vm623_vm1, %v854_v40  ;;  %v1269_v4 = vrot.slane %v1187_v0, 5  ;;  %v1444_v0 = vld [vmem:[#allocation2 + $0x38] sm:$0x1] }
  0xfc   : > { %2217 = vrot.lane.b32.xlu0 %v2138_v47, %s3201_s9  ;;  %v861_v47 = vld [vmem:[#allocation2 + $0x4c] sm:$0xf] }
  0xfd   : > { %2368 = vrot.lane.b32.xlu1 %v2316_v52, %s3202_s17  ;;  %877 = vst.msk [vmem:[#allocation3 + $0x34] sm:$0xf] %vm623_vm1, %v861_v47  ;;  %v982_v52 = vrot.slane %v980_v18, 4  ;;  %v1184_v47 = vld [vmem:[#allocation2 + $0x50] sm:$0x1] }
  0xfe   : > { %v1262_v37 = vrot.slane %v1184_v47, 5  ;;  %v1453_v47 = vld [vmem:[#allocation2 + $0x5c] sm:$0x1] }
  0xff   : > { %v1116_v5 = vpop.permute.xlu1 %1115 }
 0x100   : > { %2366 = vrot.lane.b32.xlu0 %v2313_v60, %s3202_s17  ;;  %1156 = vst.msk [vmem:[#allocation3 + $0x20] sm:$0xf] %vm1147_vm15, %v1116_v5  ;;  %v1091_v60 = vrot.slane %v1089_v46, 4  ;;  %v986_v5 = vor.u32 %v985_v53, %v982_v52  ;;  %v1175_v53 = vld [vmem:[#allocation2 + $0x2c] sm:$0x1]  ;;  %v1263_v48 = vsel %vm3634_vm14, %v1261_v50, %v1262_v37 }
 0x101   : > { %2384 = vrot.lane.b32.xlu1 %v2344_v7, %s3202_s17  ;;  %v2320_v7 = vsel %vm3634_vm14, %v2902_v49, %v2319_v13  ;;  %v1095_v13 = vshll.u32 %v903_v34, 16  ;;  %v2887_v49 = vrot.slane %v1170_v1, 9  ;;  %v1443_v1 = vld [vmem:[#allocation2 + $0x34] sm:$0xf] }
 0x102   : > { %v1100_v6 = vpop.permute.xlu0 %1099  ;;  %v1092_v16 = vor.u32 %v1091_v60, %v3853_v54  ;;  %v987_v27 = vrot.slane %v986_v5, 4  ;;  %v1173_v60 = vld [vmem:[#allocation2 + $0x24] sm:$0xe]  ;;  %v1343_v37 = vld [vmem:[#allocation2 + $0x34] sm:$0xf] }
 0x103   : > { %1148 = vst.msk [vmem:[#allocation3] sm:$0xf] %vm1147_vm15, %v1100_v6  ;;  %v1118_v11 = vpop.permute.xlu1 %1117  ;;  %v3876_v6 = vld [vmem:[#allocation2 + $0x1c] sm:$0xf]  ;;  %v1097_v57 = vrot.slane %v1095_v13, 5 }
 0x104   : > { %2382 = vrot.lane.b32.xlu0 %v2341_v14, %s3202_s17  ;;  %1157 = vst.msk [vmem:[#allocation3 + $0x24] sm:$0xf] %vm1147_vm15, %v1118_v11  ;;  %v1093_v32 = vrot.slane %v1092_v16, 4  ;;  %v1231_v23 = vrot.slane %v3876_v6, 5  ;;  %v1440_v16 = vld [vmem:[#allocation2 + $0x28] sm:$0xf] }
 0x105   : > { %1109 = vrot.lane.b32.xlu1 %v978_v9, %s3195_s14  ;;  %v3092_v9 = vld [vmem:[%s4307_s3] sm:$0xff]  }
 0x106   : > { %v1102_v42 = vpop.permute.xlu0 %1101  ;;  %2980 = vmatprep.subr.bf16.mxu0 %v3092_v9  ;;  %3000 = vmatprep.subr.bf16.mxu1 %v3092_v9  ;;  %v1098_v39 = vsel %vm3611_vm11, %v1093_v32, %v1097_v57  ;;  %v1233_v41 = vrot.slane %v1231_v23, 4  ;;  %v1232_v56 = vsel %vm3634_vm14, %v2887_v49, %v1231_v23  ;;  %v1441_v23 = vld [vmem:[#allocation2 + $0x2c] sm:$0x1]  ;;  %v1348_v49 = vld [vmem:[#allocation2 + $0x54] sm:$0xf] }
 0x107   : > { %1149 = vst.msk [vmem:[#allocation3 + $0x4] sm:$0xf] %vm1147_vm15, %v1102_v42  ;;  %v1106_v19 = vpop.permute.xlu1 %1105  ;;  %v1234_v42 = vrot.slane %v1172_v36, 5  ;;  %2981 = vmatpush3.bf16.msra.mxu0 %v3092_v9  ;;  %3003 = vmatpush3.bf16.msra.mxu1 %v3092_v9  ;;  %v1515_v9 = vshll.u32 %v1440_v16, 16 }
 0x108   : > { %1107 = vrot.lane.b32.xlu0 %v968_v35, %s3195_s14  ;;  %1151 = vst.msk [vmem:[#allocation3 + $0xc] sm:$0xf] %vm1147_vm15, %v1106_v19  ;;  %v862_v35 = vld [vmem:[#allocation2 + $0x54] sm:$0xf]  ;;  %v1174_v19 = vld [vmem:[#allocation2 + $0x28] sm:$0xf] }
 0x109   : > { %1125 = vrot.lane.b32.xlu1 %v1074_v38, %s3195_s14  ;;  %v992_v38 = vsel %vm3611_vm11, %v987_v27, %v3837_v44  ;;  %878 = vst.msk [vmem:[#allocation3 + $0x38] sm:$0xf] %vm623_vm1, %v862_v35  ;;  %v1088_v44 = vsel %vm3611_vm11, %v1083_v62, %v3853_v54  ;;  %v1238_v51 = vrot.slane %v1174_v19, 5  ;;  %vm1416_vm1 = vcmask 126048   ;;  %v1439_v27 = vld [vmem:[#allocation2 + $0x24] sm:$0xf] }
 0x10a   : > { %v1104_v59 = vpop.permute.xlu0 %1103  ;;  %v1241_v54 = vrot.slane %v1175_v53, 5  ;;  %v1506_v57 = vshrl.u32 %v1439_v27, 16  ;;  %v3946_v40 = vrot.slane %v1515_v9, 5  ;;  %v1509_v36 = vshll.u32 %v1439_v27, 16  ;;  %v1350_v9 = vld [vmem:[#allocation2 + $0x60] sm:$0xf] }
 0x10b   : > { %1150 = vst.msk [vmem:[#allocation3 + $0x8] sm:$0xf] %vm1147_vm15, %v1104_v59  ;;  %v1122_v61 = vpop.permute.xlu1 %1121  ;;  %v2891_v59 = vrot.slane %v1182_v43, 9  ;;  %v1240_v34 = vrot.slane %v1238_v51, 4  ;;  %v1539_v43 = vshll.u32 %v1443_v1, 16 }
 0x10c   : > { %1123 = vrot.lane.b32.xlu0 %v1064_v3, %s3195_s14  ;;  %1159 = vst.msk [vmem:[#allocation3 + $0x2c] sm:$0xf] %vm1147_vm15, %v1122_v61  ;;  %v1235_v3 = vsel %vm3634_vm14, %v1233_v41, %v1234_v42  ;;  %v1266_v61 = vrot.slane %v1186_v55, 5  ;;  %v1525_v41 = vshll.u32 %v1441_v23, 16  ;;  %v1508_v42 = vrot.slane %v1506_v57, 4 }
 0x10d   : > { %2372 = vrot.lane.b32.xlu1 %v2323_v58, %s3202_s17  ;;  %v1242_v5 = vsel %vm3634_vm14, %v1240_v34, %v1241_v54 }
 0x10e   : > { %v1120_v14 = vpop.permute.xlu0 %1119  ;;  %v1268_v25 = vrot.slane %v1266_v61, 4  ;;  %v1267_v33 = vsel %vm3634_vm14, %v2892_v2, %v1266_v61  ;;  %v1527_v55 = vrot.slane %v1525_v41, 5  ;;  %v1351_v61 = vld [vmem:[#allocation2 + $0x64] sm:$0xf] }
 0x10f   : > { %1158 = vst.msk [vmem:[#allocation3 + $0x28] sm:$0xf] %vm1147_vm15, %v1120_v14  ;;  %v1274_v31 = vpop.permute.xlu1 %1273 }
 0x110   : > { %2370 = vrot.lane.b32.xlu0 %v2320_v7, %s3202_s17  ;;  %1321 = vst.msk [vmem:[#allocation3 + $0x4] sm:$0xf] %vm1319_vm2, %v1274_v31  ;;  %v1260_v7 = vsel %vm3634_vm14, %v2891_v59, %v1259_v20  ;;  %v1270_v31 = vsel %vm3634_vm14, %v1268_v25, %v1269_v4  ;;  %v1455_v59 = vld [vmem:[#allocation2 + $0x64] sm:$0xf] }
 0x111   : > { %2388 = vrot.lane.b32.xlu1 %v2351_v8, %s3202_s17  ;;  %v2888_v8 = vrot.slane %v1173_v60, 9  ;;  %v1635_v4 = vshll.u32 %v1455_v59, 16  ;;  %v1639_v12 = vshrl.u32 %v1455_v59, 16 }
 0x112   : > { %v1272_v11 = vpop.permute.xlu0 %1271 }
 0x113   : > { %1320 = vst.msk [vmem:[#allocation3] sm:$0xf] %vm1319_vm2, %v1272_v11  ;;  %v1290_v28 = vpop.permute.xlu1 %1289  ;;  %v1239_v15 = vsel %vm3634_vm14, %v2888_v8, %v1238_v51  ;;  %v1341_v11 = vld [vmem:[#allocation2 + $0x28] sm:$0xf]  ;;  %v1543_v51 = vshrl.u32 %v1443_v1, 16  ;;  %v3970_v57 = vrot.slane %v1635_v4, 5 }
 0x114   : > { %2386 = vrot.lane.b32.xlu0 %v2348_v17, %s3202_s17  ;;  %1329 = vst.msk [vmem:[#allocation3 + $0x24] sm:$0xf] %vm1319_vm2, %v1290_v28  ;;  %v1519_v17 = vshrl.u32 %v1440_v16, 16  ;;  %v1641_v23 = vrot.slane %v1639_v12, 4  ;;  %v1732_v4 = vld [vmem:[#allocation2 + $0x54] sm:$0xe] }
 0x115   : > { %1113 = vrot.lane.b32.xlu1 %v1002_v21, %s3195_s14  ;;  %v1452_v21 = vld [vmem:[#allocation2 + $0x58] sm:$0xf]  ;;  %v1545_v25 = vrot.slane %v1543_v51, 4 }
 0x116   : > { %v1288_v18 = vpop.permute.xlu0 %1287  ;;  %v1521_v28 = vrot.slane %v1519_v17, 4  ;;  %v1611_v30 = vshll.u32 %v1452_v21, 16  ;;  %v1615_v35 = vshrl.u32 %v1452_v21, 16  ;;  %v1642_v1 = vor.u32 %v1641_v23, %v3970_v57 }
 0x117   : > { %1328 = vst.msk [vmem:[#allocation3 + $0x20] sm:$0xf] %vm1319_vm2, %v1288_v18  ;;  %v1278_v46 = vpop.permute.xlu1 %1277  ;;  %v1349_v18 = vld [vmem:[#allocation2 + $0x58] sm:$0xf] }
 0x118   : > { %1111 = vrot.lane.b32.xlu0 %v992_v38, %s3195_s14  ;;  %1323 = vst.msk [vmem:[#allocation3 + $0xc] sm:$0xf] %vm1319_vm2, %v1278_v46  ;;  %v1451_v38 = vld [vmem:[#allocation2 + $0x54] sm:$0xf]  ;;  %v1522_v20 = vor.u32 %v1521_v28, %v3946_v40  ;;  %v1511_v46 = vrot.slane %v1509_v36, 5 }
 0x119   : > { %1129 = vrot.lane.b32.xlu1 %v1098_v39, %s3195_s14  ;;  %v1602_v19 = vshrl.u32 %v1451_v38, 16  ;;  %v1456_v36 = vld [vmem:[#allocation2 + $0x68] sm:$0x1] }
 0x11a   : > { %v1276_v45 = vpop.permute.xlu0 %1275  ;;  %v1512_v34 = vor.u32 %v1511_v46, %v1508_v42 }
 0x11b   : > { %1322 = vst.msk [vmem:[#allocation3 + $0x8] sm:$0xf] %vm1319_vm2, %v1276_v45  ;;  %v1294_v52 = vpop.permute.xlu1 %1293  ;;  %v3954_v45 = vrot.slane %v1611_v30, 5  ;;  %v1604_v54 = vrot.slane %v1602_v19, 4 }
 0x11c   : > { %1127 = vrot.lane.b32.xlu0 %v1088_v44, %s3195_s14  ;;  %1331 = vst.msk [vmem:[#allocation3 + $0x2c] sm:$0xf] %vm1319_vm2, %v1294_v52  ;;  %v1605_v44 = vshll.u32 %v1451_v38, 16  ;;  %v1442_v52 = vld [vmem:[#allocation2 + $0x30] sm:$0xf]  ;;  %s3103_s14 = sshll.u32 %s3203_s15, 4  ;;  %s3104_s14 = int_to_ptr.vmem [resolvable:$false] %s3103_s14 }
 0x11d   : > { %1281 = vrot.lane.b32.xlu1 %v1235_v3, %s3196_s13  ;;  %v1617_v3 = vrot.slane %v1615_v35, 4  ;;  %v1533_v8 = vshll.u32 %v1442_v52, 16 }
 0x11e   : > { %v1292_v58 = vpop.permute.xlu0 %1291  ;;  %v1607_v60 = vrot.slane %v1605_v44, 5 }
 0x11f   : > { %1330 = vst.msk [vmem:[#allocation3 + $0x28] sm:$0xf] %vm1319_vm2, %v1292_v58  ;;  %v1371_v63 = vpop.permute.xlu1 %1370  ;;  %v1342_v58 = vld [vmem:[#allocation2 + $0x30] sm:$0xf]  ;;  %v1535_v27 = vrot.slane %v1533_v8, 5 }
 0x120   : > { %1279 = vrot.lane.b32.xlu0 %v1232_v56, %s3196_s13  ;;  %1418 = vst.msk [vmem:[#allocation3 + $0x4] sm:$0xf] %vm1416_vm1, %v1371_v63  ;;  %v1621_v56 = vshll.u32 %v1453_v47, 16  ;;  %v1618_v63 = vor.u32 %v1617_v3, %v3954_v45 }
 0x121   : > { %1297 = vrot.lane.b32.xlu1 %v1263_v48, %s3196_s13  ;;  %v1523_v48 = vrot.slane %v1522_v20, 4  ;;  %v1645_v20 = vshll.u32 %v1456_v36, 16 }
 0x122   : > { %v1369_v10 = vpop.permute.xlu0 %1368  ;;  %v1623_v2 = vrot.slane %v1621_v56, 5  ;;  %v1619_v21 = vrot.slane %v1618_v63, 4  ;;  %v1724_v63 = vld [vmem:[#allocation2 + $0x34] sm:$0xf] }
 0x123   : > { %1417 = vst.msk [vmem:[#allocation3] sm:$0xf] %vm1416_vm1, %v1369_v10  ;;  %v1387_v14 = vpop.permute.xlu1 %1386  ;;  %v1528_v16 = vsel %vm3611_vm11, %v1523_v48, %v1527_v55  ;;  %v1785_v12 = vrot.slane %v1724_v63, 5 }
 0x124   : > { %1295 = vrot.lane.b32.xlu0 %v1260_v7, %s3196_s13  ;;  %1426 = vst.msk [vmem:[#allocation3 + $0x24] sm:$0xf] %vm1416_vm1, %v1387_v14  ;;  %v1530_v7 = vshrl.u32 %v1442_v52, 16  ;;  %v1454_v14 = vld [vmem:[#allocation2 + $0x60] sm:$0xf]  ;;  %v1624_v41 = vsel %vm3611_vm11, %v1619_v21, %v1623_v2 }
 0x125   : > { %1285 = vrot.lane.b32.xlu1 %v1242_v5, %s3196_s13  ;;  %v3961_v5 = vrot.slane %v1539_v43, 5  ;;  %v1722_v52 = vld [vmem:[#allocation2 + $0x2c] sm:$0x1]  ;;  %v1736_v2 = vld [vmem:[#allocation2 + $0x64] sm:$0xf] }
 0x126   : > { %v1385_v13 = vpop.permute.xlu0 %1384  ;;  %v1532_v17 = vrot.slane %v1530_v7, 4  ;;  %v1781_v48 = vrot.slane %v1722_v52, 5 }
 0x127   : > { %1425 = vst.msk [vmem:[#allocation3 + $0x20] sm:$0xf] %vm1416_vm1, %v1385_v13  ;;  %v1375_v6 = vpop.permute.xlu1 %1374  ;;  %v1513_v13 = vrot.slane %v1512_v34, 4  ;;  %v1720_v34 = vld [vmem:[#allocation2 + $0x24] sm:$0xe] }
 0x128   : > { %1283 = vrot.lane.b32.xlu0 %v1239_v15, %s3196_s13  ;;  %1420 = vst.msk [vmem:[#allocation3 + $0xc] sm:$0xf] %vm1416_vm1, %v1375_v6  ;;  %v1549_v6 = vshll.u32 %v1444_v0, 16  ;;  %v1536_v38 = vor.u32 %v1535_v27, %v1532_v17  ;;  %v2895_v7 = vrot.slane %v1720_v34, 9  ;;  %v1723_v27 = vld [vmem:[#allocation2 + $0x30] sm:$0xe] }
 0x129   : > { %1301 = vrot.lane.b32.xlu1 %v1270_v31, %s3196_s13  ;;  %v1608_v31 = vor.u32 %v1607_v60, %v1604_v54  ;;  %v1991_v34 = vld [vmem:[#allocation2 + $0x40] sm:$0xf] }
 0x12a   : > { %v1373_v26 = vpop.permute.xlu0 %1372  ;;  %v1551_v30 = vrot.slane %v1549_v6, 5  ;;  %v1537_v19 = vrot.slane %v1536_v38, 4 }
 0x12b   : > { %1419 = vst.msk [vmem:[#allocation3 + $0x8] sm:$0xf] %vm1416_vm1, %v1373_v26  ;;  %v1391_v32 = vpop.permute.xlu1 %1390  ;;  %v1629_v26 = vshll.u32 %v1454_v14, 16  ;;  %v1609_v35 = vrot.slane %v1608_v31, 4 }
 0x12c   : > { %1299 = vrot.lane.b32.xlu0 %v1267_v33, %s3196_s13  ;;  %1428 = vst.msk [vmem:[#allocation3 + $0x2c] sm:$0xf] %vm1416_vm1, %v1391_v32  ;;  %v1626_v33 = vshrl.u32 %v1454_v14, 16  ;;  %v1546_v32 = vor.u32 %v1545_v25, %v3961_v5 }
 0x12d   : > { %1378 = vrot.lane.b32.xlu1 %v1341_v11, %s3197_s26  ;;  %v1614_v47 = vsel %vm3611_vm11, %v1609_v35, %v3954_v45  ;;  %v1542_v45 = vsel %vm3611_vm11, %v1537_v19, %v3961_v5  ;;  %v2000_v19 = vld [vmem:[#allocation2 + $0x64] sm:$0xf] }
 0x12e   : > { %v1389_v62 = vpop.permute.xlu0 %1388  ;;  %v1547_v42 = vrot.slane %v1546_v32, 4  ;;  %v2896_v32 = vrot.slane %v1723_v27, 9  ;;  %v2159_v52 = vshll.u32 %v2000_v19, 16 }
 0x12f   : > { %1427 = vst.msk [vmem:[#allocation3 + $0x28] sm:$0xf] %vm1416_vm1, %v1389_v62  ;;  %v1652_v39 = vpop.permute.xlu1 %1651  ;;  %v1628_v62 = vrot.slane %v1626_v33, 4  ;;  %v1813_v33 = vrot.slane %v1736_v2, 5 }
 0x130   : > { %1376 = vrot.lane.b32.xlu0 %v1340_v22, %s3197_s26  ;;  %1699 = vst.msk [vmem:[#allocation3 + $0x4] sm:$0xf] %vm1697_vm3, %v1652_v39  ;;  %v1518_v22 = vsel %vm3611_vm11, %v1513_v13, %v3946_v40  ;;  %v1721_v40 = vld [vmem:[#allocation2 + $0x28] sm:$0xf]  ;;  %v1552_v3 = vsel %vm3611_vm11, %v1547_v42, %v1551_v30  ;;  %v2899_v13 = vrot.slane %v1732_v4, 9  ;;  %v1786_v35 = vsel %vm3634_vm14, %v2896_v32, %v1785_v12 }
 0x131   : > { %1394 = vrot.lane.b32.xlu1 %v1349_v18, %s3197_s26  ;;  %v1631_v18 = vrot.slane %v1629_v26, 5  ;;  %v1778_v43 = vrot.slane %v1721_v40, 5  ;;  %v2087_v4 = vshll.u32 %v1991_v34, 16 }
 0x132   : > { %v1650_v50 = vpop.permute.xlu0 %1649 }
 0x133   : > { %1698 = vst.msk [vmem:[#allocation3] sm:$0xf] %vm1697_vm3, %v1650_v50  ;;  %v1668_v53 = vpop.permute.xlu1 %1667  ;;  %v1632_v44 = vor.u32 %v1631_v18, %v1628_v62  ;;  %v1643_v50 = vrot.slane %v1642_v1, 4  ;;  %v1988_v62 = vld [vmem:[#allocation2 + $0x34] sm:$0xf] }
 0x134   : > { %1392 = vrot.lane.b32.xlu0 %v1348_v49, %s3197_s26  ;;  %1707 = vst.msk [vmem:[#allocation3 + $0x24] sm:$0xf] %vm1697_vm3, %v1668_v53  ;;  %v1733_v53 = vld [vmem:[#allocation2 + $0x58] sm:$0xf]  ;;  %v2063_v42 = vshll.u32 %v1988_v62, 16  ;;  %v2067_v1 = vshrl.u32 %v1988_v62, 16 }
 0x135   : > { %1382 = vrot.lane.b32.xlu1 %v1343_v37, %s3197_s26  ;;  %v1647_v37 = vrot.slane %v1645_v20, 5  ;;  %v1633_v55 = vrot.slane %v1632_v44, 4  ;;  %v1806_v54 = vrot.slane %v1733_v53, 5  ;;  %v1987_v20 = vld [vmem:[#allocation2 + $0x30] sm:$0xf]  ;;  %v2163_v53 = vshrl.u32 %v2000_v19, 16 }
 0x136   : > { %v1666_v10 = vpop.permute.xlu0 %1665 }
 0x137   : > { %1706 = vst.msk [vmem:[#allocation3 + $0x20] sm:$0xf] %vm1697_vm3, %v1666_v10  ;;  %v1656_v15 = vpop.permute.xlu1 %1655  ;;  %v1648_v59 = vsel %vm3611_vm11, %v1643_v50, %v1647_v37  ;;  %v1638_v0 = vsel %vm3611_vm11, %v1633_v55, %v3970_v57  ;;  %v1808_v5 = vrot.slane %v1806_v54, 4  ;;  %v1807_v21 = vsel %vm3634_vm14, %v2899_v13, %v1806_v54  ;;  %v1989_v50 = vld [vmem:[#allocation2 + $0x38] sm:$0x1] }
 0x138   : > { %1380 = vrot.lane.b32.xlu0 %v1342_v58, %s3197_s26  ;;  %1701 = vst.msk [vmem:[#allocation3 + $0xc] sm:$0xf] %vm1697_vm3, %v1656_v15  ;;  %v1780_v58 = vrot.slane %v1778_v43, 4  ;;  %v1725_v15 = vld [vmem:[#allocation2 + $0x38] sm:$0x1]  ;;  %v4042_v37 = vrot.slane %v2063_v42, 5 }
 0x139   : > { %1398 = vrot.lane.b32.xlu1 %v1351_v61, %s3197_s26  ;;  %v1734_v61 = vld [vmem:[#allocation2 + $0x5c] sm:$0x1]  ;;  %v1788_v17 = vrot.slane %v1725_v15, 5  ;;  %v2003_v13 = vld [vmem:[#allocation2 + $0x70] sm:$0xf] }
 0x13a   : > { %v1654_v11 = vpop.permute.xlu0 %1653  ;;  %v1782_v10 = vsel %vm3634_vm14, %v1780_v58, %v1781_v48  ;;  %v1809_v25 = vrot.slane %v1734_v61, 5  ;;  %v2073_v58 = vshll.u32 %v1989_v50, 16  ;;  %v2001_v61 = vld [vmem:[#allocation2 + $0x68] sm:$0x1]  ;;  %v1898_v42 = vld [vmem:[#allocation2 + $0x6c] sm:$0xf] }
 0x13b   : > { %1700 = vst.msk [vmem:[#allocation3 + $0x8] sm:$0xf] %vm1697_vm3, %v1654_v11  ;;  %v1672_v28 = vpop.permute.xlu1 %1671  ;;  %v1737_v11 = vld [vmem:[#allocation2 + $0x68] sm:$0x1] }
 0x13c   : > { %1396 = vrot.lane.b32.xlu0 %v1350_v9, %s3197_s26  ;;  %1709 = vst.msk [vmem:[#allocation3 + $0x2c] sm:$0xf] %vm1697_vm3, %v1672_v28  ;;  %v1810_v6 = vsel %vm3634_vm14, %v1808_v5, %v1809_v25  ;;  %v1787_v9 = vrot.slane %v1785_v12, 4  ;;  %v1815_v28 = vrot.slane %v1813_v33, 4  ;;  %v1816_v36 = vrot.slane %v1737_v11, 5  ;;  %s3105_s26 = scalar_lea.vmem %s3104_s14, 4096 }
 0x13d   : > { %1659 = vrot.lane.b32.xlu1 %v1528_v16, %s3198_s27  ;;  %v1779_v16 = vsel %vm3634_vm14, %v2895_v7, %v1778_v43  ;;  %v2069_v43 = vrot.slane %v2067_v1, 4  ;;  %v1896_v7 = vld [vmem:[#allocation2 + $0x60] sm:$0xf]  ;;  %v2091_v12 = vshrl.u32 %v1991_v34, 16  ;;  %v2075_v2 = vrot.slane %v2073_v58, 5 }
 0x13e   : > { %v1670_v39 = vpop.permute.xlu0 %1669  ;;  %v1789_v23 = vsel %vm3634_vm14, %v1787_v9, %v1788_v17  ;;  %v1891_v25 = vld [vmem:[#allocation2 + $0x40] sm:$0xf]  ;;  %v1992_v11 = vld [vmem:[#allocation2 + $0x44] sm:$0x1] }
 0x13f   : > { %1708 = vst.msk [vmem:[#allocation3 + $0x28] sm:$0xf] %vm1697_vm3, %v1670_v39  ;;  %v1821_v46 = vpop.permute.xlu1 %1820  ;;  %v1817_v39 = vsel %vm3634_vm14, %v1815_v28, %v1816_v36  ;;  %v2070_v54 = vor.u32 %v2069_v43, %v4042_v37  ;;  %v2093_v28 = vrot.slane %v2091_v12, 4  ;;  %v2183_v36 = vshll.u32 %v2003_v13, 16  ;;  %v2004_v43 = vld [vmem:[#allocation2 + $0x74] sm:$0x1] }
 0x140   : > { %1657 = vrot.lane.b32.xlu0 %v1518_v22, %s3198_s27  ;;  %1868 = vst.msk [vmem:[#allocation3 + $0x4] sm:$0xf] %vm1866_vm4, %v1821_v46  ;;  %v1735_v22 = vld [vmem:[#allocation2 + $0x60] sm:$0xe] }
 0x141   : > { %1675 = vrot.lane.b32.xlu1 %v1624_v41, %s3198_s27  ;;  %v2900_v38 = vrot.slane %v1735_v22, 9  ;;  %v2187_v22 = vshrl.u32 %v2003_v13, 16 }
 0x142   : > { %v1819_v49 = vpop.permute.xlu0 %1818 }
 0x143   : > { %1867 = vst.msk [vmem:[#allocation3] sm:$0xf] %vm1866_vm4, %v1819_v49  ;;  %v1837_v51 = vpop.permute.xlu1 %1836  ;;  %v1814_v46 = vsel %vm3634_vm14, %v2900_v38, %v1813_v33  ;;  %v1888_v49 = vld [vmem:[#allocation2 + $0x30] sm:$0xf] }
 0x144   : > { %1673 = vrot.lane.b32.xlu0 %v1614_v47, %s3198_s27  ;;  %1876 = vst.msk [vmem:[#allocation3 + $0x24] sm:$0xf] %vm1866_vm4, %v1837_v51  ;;  %v1889_v47 = vld [vmem:[#allocation2 + $0x34] sm:$0xf]  ;;  %v2057_v51 = vshll.u32 %v1987_v20, 16 }
 0x145   : > { %1663 = vrot.lane.b32.xlu1 %v1552_v3, %s3198_s27  ;;  %v2054_v3 = vshrl.u32 %v1987_v20, 16  ;;  %v1899_v33 = vld [vmem:[#allocation2 + $0x70] sm:$0xf] }
 0x146   : > { %v1835_v56 = vpop.permute.xlu0 %1834 }
 0x147   : > { %1875 = vst.msk [vmem:[#allocation3 + $0x20] sm:$0xf] %vm1866_vm4, %v1835_v56  ;;  %v1825_v60 = vpop.permute.xlu1 %1824  ;;  %v1897_v56 = vld [vmem:[#allocation2 + $0x64] sm:$0xf]  ;;  %v2056_v48 = vrot.slane %v2054_v3, 4  ;;  %v2189_v3 = vrot.slane %v2187_v22, 4 }
 0x148   : > { %1661 = vrot.lane.b32.xlu0 %v1542_v45, %s3198_s27  ;;  %1870 = vst.msk [vmem:[#allocation3 + $0xc] sm:$0xf] %vm1866_vm4, %v1825_v60  ;;  %v1999_v45 = vld [vmem:[#allocation2 + $0x60] sm:$0xf]  ;;  %v2059_v60 = vrot.slane %v2057_v51, 5 }
 0x149   : > { %1679 = vrot.lane.b32.xlu1 %v1648_v59, %s3198_s27  ;;  %v2150_v63 = vshrl.u32 %v1999_v45, 16 }
 0x14a   : > { %v1823_v8 = vpop.permute.xlu0 %1822  ;;  %v2060_v9 = vor.u32 %v2059_v60, %v2056_v48 }
 0x14b   : > { %1869 = vst.msk [vmem:[#allocation3 + $0x8] sm:$0xf] %vm1866_vm4, %v1823_v8  ;;  %v1841_v14 = vpop.permute.xlu1 %1840  ;;  %v4050_v8 = vrot.slane %v2159_v52, 5  ;;  %v2152_v17 = vrot.slane %v2150_v63, 4 }
 0x14c   : > { %1677 = vrot.lane.b32.xlu0 %v1638_v0, %s3198_s27  ;;  %1878 = vst.msk [vmem:[#allocation3 + $0x2c] sm:$0xf] %vm1866_vm4, %v1841_v14  ;;  %v2153_v0 = vshll.u32 %v1999_v45, 16  ;;  %v1990_v14 = vld [vmem:[#allocation2 + $0x3c] sm:$0xf]  ;;  %s2964_s27 = sshll.u32 %s3175_s21, 4 }
 0x14d   : > { %1828 = vrot.lane.b32.xlu1 %v1782_v10, %s3199_s30  ;;  %v2165_v10 = vrot.slane %v2163_v53, 4  ;;  %v2081_v32 = vshll.u32 %v1990_v14, 16 }
 0x14e   : > { %v1839_v31 = vpop.permute.xlu0 %1838  ;;  %v2155_v27 = vrot.slane %v2153_v0, 5 }
 0x14f   : > { %1877 = vst.msk [vmem:[#allocation3 + $0x28] sm:$0xf] %vm1866_vm4, %v1839_v31  ;;  %v1919_v26 = vpop.permute.xlu1 %1918  ;;  %v1890_v31 = vld [vmem:[#allocation2 + $0x3c] sm:$0xf]  ;;  %v2083_v20 = vrot.slane %v2081_v32, 5 }
 0x150   : > { %1826 = vrot.lane.b32.xlu0 %v1779_v16, %s3199_s30  ;;  %1966 = vst.msk [vmem:[#allocation3 + $0x4] sm:$0xf] %vm1964_vm5, %v1919_v26  ;;  %v2169_v16 = vshll.u32 %v2001_v61, 16  ;;  %v2166_v26 = vor.u32 %v2165_v10, %v4050_v8  ;;  %v2280_v32 = vld [vmem:[#allocation2 + $0x60] sm:$0xe] }
 0x151   : > { %1844 = vrot.lane.b32.xlu1 %v1810_v6, %s3199_s30  ;;  %v2071_v6 = vrot.slane %v2070_v54, 4  ;;  %v2193_v54 = vshll.u32 %v2004_v43, 16 }
 0x152   : > { %v1917_v57 = vpop.permute.xlu0 %1916  ;;  %v2171_v38 = vrot.slane %v2169_v16, 5  ;;  %v2167_v19 = vrot.slane %v2166_v26, 4  ;;  %v2272_v26 = vld [vmem:[#allocation2 + $0x40] sm:$0xf] }
 0x153   : > { %1965 = vst.msk [vmem:[#allocation3] sm:$0xf] %vm1964_vm5, %v1917_v57  ;;  %v1935_v30 = vpop.permute.xlu1 %1934  ;;  %v2076_v62 = vsel %vm3611_vm11, %v2071_v6, %v2075_v2 }
 0x154   : > { %1842 = vrot.lane.b32.xlu0 %v1807_v21, %s3199_s30  ;;  %1974 = vst.msk [vmem:[#allocation3 + $0x24] sm:$0xf] %vm1964_vm5, %v1935_v30  ;;  %v2078_v21 = vshrl.u32 %v1990_v14, 16  ;;  %v2002_v30 = vld [vmem:[#allocation2 + $0x6c] sm:$0xf]  ;;  %v2172_v58 = vsel %vm3611_vm11, %v2167_v19, %v2171_v38 }
 0x155   : > { %1832 = vrot.lane.b32.xlu1 %v1789_v23, %s3199_s30  ;;  %v4057_v23 = vrot.slane %v2087_v4, 5  ;;  %v2270_v14 = vld [vmem:[#allocation2 + $0x38] sm:$0x1]  ;;  %v2273_v38 = vld [vmem:[#allocation2 + $0x44] sm:$0x1] }
 0x156   : > { %v1933_v18 = vpop.permute.xlu0 %1932  ;;  %v2080_v1 = vrot.slane %v2078_v21, 4  ;;  %v2329_v6 = vrot.slane %v2270_v14, 5  ;;  %v2285_v19 = vld [vmem:[#allocation2 + $0x74] sm:$0x1] }
 0x157   : > { %1973 = vst.msk [vmem:[#allocation3 + $0x20] sm:$0xf] %vm1964_vm5, %v1933_v18  ;;  %v1923_v41 = vpop.permute.xlu1 %1922  ;;  %v2061_v18 = vrot.slane %v2060_v9, 4  ;;  %v2268_v9 = vld [vmem:[#allocation2 + $0x30] sm:$0xe] }
 0x158   : > { %1830 = vrot.lane.b32.xlu0 %v1786_v35, %s3199_s30  ;;  %1968 = vst.msk [vmem:[#allocation3 + $0xc] sm:$0xf] %vm1964_vm5, %v1923_v41  ;;  %v2097_v41 = vshll.u32 %v1992_v11, 16  ;;  %v2084_v45 = vor.u32 %v2083_v20, %v2080_v1  ;;  %v2903_v21 = vrot.slane %v2268_v9, 9 }
 0x159   : > { %1848 = vrot.lane.b32.xlu1 %v1817_v39, %s3199_s30  ;;  %v2156_v39 = vor.u32 %v2155_v27, %v2152_v17  ;;  %v2066_v51 = vsel %vm3611_vm11, %v2061_v18, %v4042_v37  ;;  %v2269_v37 = vld [vmem:[#allocation2 + $0x34] sm:$0xf]  ;;  %v2907_v18 = vrot.slane %v2280_v32, 9 }
 0x15a   : > { %v1921_v40 = vpop.permute.xlu0 %1920  ;;  %v2099_v52 = vrot.slane %v2097_v41, 5  ;;  %v2085_v63 = vrot.slane %v2084_v45, 4  ;;  %v2326_v4 = vrot.slane %v2269_v37, 5 }
 0x15b   : > { %1967 = vst.msk [vmem:[#allocation3 + $0x8] sm:$0xf] %vm1964_vm5, %v1921_v40  ;;  %v1939_v44 = vpop.permute.xlu1 %1938  ;;  %v2177_v40 = vshll.u32 %v2002_v30, 16  ;;  %v2157_v53 = vrot.slane %v2156_v39, 4  ;;  %v2271_v39 = vld [vmem:[#allocation2 + $0x3c] sm:$0xe] }
 0x15c   : > { %1846 = vrot.lane.b32.xlu0 %v1814_v46, %s3199_s30  ;;  %1976 = vst.msk [vmem:[#allocation3 + $0x2c] sm:$0xf] %vm1964_vm5, %v1939_v44  ;;  %v2174_v46 = vshrl.u32 %v2002_v30, 16  ;;  %v2094_v44 = vor.u32 %v2093_v28, %v4057_v23  ;;  %v2333_v30 = vrot.slane %v2272_v26, 5  ;;  %v2327_v29 = vsel %vm3634_vm14, %v2903_v21, %v2326_v4  ;;  %s2932_s30 = sshll.u32 %s3179_s22, 5  ;;  %s2694_s22 = sshll.u32 %s3575_s28, 4  ;;  %s4247_s22 = int_to_ptr.vmem [resolvable:$true] %s2694_s22 }
 0x15d   : > { %1926 = vrot.lane.b32.xlu1 %v1889_v47, %s3200_s8  ;;  %v2162_v61 = vsel %vm3611_vm11, %v2157_v53, %v4050_v8  ;;  %v2090_v8 = vsel %vm3611_vm11, %v2085_v63, %v4057_v23  ;;  %s3099_s10 = scalar_lea.vmem %s4247_s22, 2048  ;;  %p3106_p12 = scmp.lt.s32.totalorder %s4247_s22, %s3104_s14 }
 0x15e   : > { %v1937_v55 = vpop.permute.xlu0 %1936  ;;  %v2095_v48 = vrot.slane %v2094_v44, 4  ;;  %v2335_v20 = vrot.slane %v2333_v30, 4  ;;  %p3100_p9 = scmp.ne.s32.totalorder %s4247_s22, %s3099_s10  ;;  %p3107_p13 = scmp.lt.s32.totalorder %s3105_s26, %s3099_s10 }
 0x15f   : > { %1975 = vst.msk [vmem:[#allocation3 + $0x28] sm:$0xf] %vm1964_vm5, %v1937_v55  ;;  %v2200_v59 = vpop.permute.xlu1 %2199  ;;  %v2176_v55 = vrot.slane %v2174_v46, 4  ;;  %v2336_v46 = vrot.slane %v2273_v38, 5 }
 0x160   : > { %1924 = vrot.lane.b32.xlu0 %v1888_v49, %s3200_s8  ;;  %2247 = vst.msk [vmem:[#allocation3 + $0x4] sm:$0xf] %vm2245_vm6, %v2200_v59  ;;  %v4066_v49 = vrot.slane %v2183_v36, 5  ;;  %v2100_v10 = vsel %vm3611_vm11, %v2095_v48, %v2099_v52  ;;  %v2283_v52 = vld [vmem:[#allocation2 + $0x6c] sm:$0xe]  ;;  %p3101_p10 = pnand %p3100_p9, %p3286_p3  ;;  %p3108_p0 = por %p3107_p13, %p3106_p12 }
 0x161   : > { %1942 = vrot.lane.b32.xlu1 %v1897_v56, %s3200_s8  ;;  %v2179_v56 = vrot.slane %v2177_v40, 5 }
 0x162   : > { %v2198_v5 = vpop.permute.xlu0 %2197  ;;  %v2190_v34 = vor.u32 %v2189_v3, %v4066_v49  ;;  %p3102_p11 = pneg %p3101_p10 }
 0x163   : > { %2246 = vst.msk [vmem:[#allocation3] sm:$0xf] %vm2245_vm6, %v2198_v5  ;;  %v2216_v15 = vpop.permute.xlu1 %2215  ;;  %v2180_v0 = vor.u32 %v2179_v56, %v2176_v55  ;;  %v2908_v55 = vrot.slane %v2283_v52, 9 }
 0x164   : > { %1940 = vrot.lane.b32.xlu0 %v1896_v7, %s3200_s8  ;;  %2255 = vst.msk [vmem:[#allocation3 + $0x24] sm:$0xf] %vm2245_vm6, %v2216_v15  ;;  %v2191_v5 = vrot.slane %v2190_v34, 4  ;;  %v2281_v15 = vld [vmem:[#allocation2 + $0x64] sm:$0xf]  ;;  %p3109_p1 = pnand %p3108_p0, %p3102_p11 }
 0x165   : > { %1930 = vrot.lane.b32.xlu1 %v1891_v25, %s3200_s8  ;;  %v2195_v25 = vrot.slane %v2193_v54, 5  ;;  %v2181_v2 = vrot.slane %v2180_v0, 4  ;;  %v2354_v17 = vrot.slane %v2281_v15, 5 }
 0x166   : > { %v2214_v57 = vpop.permute.xlu0 %2213 }
 0x167   : > { %2254 = vst.msk [vmem:[#allocation3 + $0x20] sm:$0xf] %vm2245_vm6, %v2214_v57  ;;  %v2204_v35 = vpop.permute.xlu1 %2203  ;;  %v2196_v13 = vsel %vm3611_vm11, %v2191_v5, %v2195_v25  ;;  %v2186_v11 = vsel %vm3611_vm11, %v2181_v2, %v4066_v49  ;;  %v2356_v36 = vrot.slane %v2354_v17, 4  ;;  %v2355_v44 = vsel %vm3634_vm14, %v2907_v18, %v2354_v17 }
 0x168   : > { %1928 = vrot.lane.b32.xlu0 %v1890_v31, %s3200_s8  ;;  %2249 = vst.msk [vmem:[#allocation3 + $0xc] sm:$0xf] %vm2245_vm6, %v2204_v35  ;;  %v2328_v31 = vrot.slane %v2326_v4, 4  ;;  %v2904_v49 = vrot.slane %v2271_v39, 9 }
 0x169   : > { %1946 = vrot.lane.b32.xlu1 %v1899_v33, %s3200_s8  ;;  %v2282_v33 = vld [vmem:[#allocation2 + $0x68] sm:$0x1] }
 0x16a   : > { %v2202_v47 = vpop.permute.xlu0 %2201  ;;  %v2330_v28 = vsel %vm3634_vm14, %v2328_v31, %v2329_v6  ;;  %v2357_v22 = vrot.slane %v2282_v33, 5  ;;  %v2334_v45 = vsel %vm3634_vm14, %v2904_v49, %v2333_v30 }
 0x16b   : > { %2248 = vst.msk [vmem:[#allocation3 + $0x8] sm:$0xf] %vm2245_vm6, %v2202_v47  ;;  %v2220_v50 = vpop.permute.xlu1 %2219 }
 0x16c   : > { %1944 = vrot.lane.b32.xlu0 %v1898_v42, %s3200_s8  ;;  %2257 = vst.msk [vmem:[#allocation3 + $0x2c] sm:$0xf] %vm2245_vm6, %v2220_v50  ;;  %v2358_v1 = vsel %vm3634_vm14, %v2356_v36, %v2357_v22  ;;  %v2337_v50 = vsel %vm3634_vm14, %v2335_v20, %v2336_v46  ;;  %s2691_s8 = sadd.s32 %s2964_s27, %s2932_s30 }
 0x16d   : > { %2207 = vrot.lane.b32.xlu1 %v2076_v62, %s3201_s9  ;;  %v2284_v62 = vld [vmem:[#allocation2 + $0x70] sm:$0xf]  ;;  %s2933_s21 = sshll.u32 %s2691_s8, 7 }
 0x16e   : > { %v2218_v59 = vpop.permute.xlu0 %2217  ;;  %v2361_v40 = vrot.slane %v2284_v62, 5  ;;  %s4244_s16 = scalar_lea.hbm %s4309_s5, %s2933_s21 }
 0x16f   : > { %2256 = vst.msk [vmem:[#allocation3 + $0x28] sm:$0xf] %vm2245_vm6, %v2218_v59  ;;  %v2369_v60 = vpop.permute.xlu1 %2368 }
 0x170   : > { %2205 = vrot.lane.b32.xlu0 %v2066_v51, %s3201_s9  ;;  %2416 = vst.msk [vmem:[#allocation3 + $0x4] sm:$0xf] %vm2414_vm7, %v2369_v60  ;;  %v2363_v43 = vrot.slane %v2361_v40, 4  ;;  %v2364_v51 = vrot.slane %v2285_v19, 5  ;;  %v2362_v48 = vsel %vm3634_vm14, %v2908_v55, %v2361_v40 }
 0x171   : > { %2223 = vrot.lane.b32.xlu1 %v2172_v58, %s3201_s9 }
 0x172   : > { %v2367_v7 = vpop.permute.xlu0 %2366  ;;  %v2365_v59 = vsel %vm3634_vm14, %v2363_v43, %v2364_v51 }
 0x173   : > { %2415 = vst.msk [vmem:[#allocation3] sm:$0xf] %vm2414_vm7, %v2367_v7  ;;  %v2385_v12 = vpop.permute.xlu1 %2384 }
 0x174   : > { %2221 = vrot.lane.b32.xlu0 %v2162_v61, %s3201_s9  ;;  %2424 = vst.msk [vmem:[#allocation3 + $0x24] sm:$0xf] %vm2414_vm7, %v2385_v12 }
 0x175   : > { %2211 = vrot.lane.b32.xlu1 %v2100_v10, %s3201_s9 }
 0x176   : > { %v2383_v16 = vpop.permute.xlu0 %2382 }
 0x177   : > { %2423 = vst.msk [vmem:[#allocation3 + $0x20] sm:$0xf] %vm2414_vm7, %v2383_v16  ;;  %v1110_v27 = vpop.permute.xlu1 %1109 }
 0x178   : > { %2209 = vrot.lane.b32.xlu0 %v2090_v8, %s3201_s9  ;;  %1153 = vst.msk [vmem:[#allocation3 + $0x14] sm:$0xf] %vm1147_vm15, %v1110_v27 }
 0x179   : > { %2227 = vrot.lane.b32.xlu1 %v2196_v13, %s3201_s9 }
 0x17a   : > { %v1108_v57 = vpop.permute.xlu0 %1107  ;;  %v3088_v23 = vld [vmem:[#allocation3] sm:$0xff]  }
 0x17b   : > { %1152 = vst.msk [vmem:[#allocation3 + $0x10] sm:$0xf] %vm1147_vm15, %v1108_v57  ;;  %v1126_v35 = vpop.permute.xlu1 %1125  ;;  %2982 = vmatprep.mubr.msk.bf16.mxu0 %vm2518_vm8, %v3088_v23 }
 0x17c   : > { %2225 = vrot.lane.b32.xlu0 %v2186_v11, %s3201_s9  ;;  %1161 = vst.msk [vmem:[#allocation3 + $0x34] sm:$0xf] %vm1147_vm15, %v1126_v35 }
 0x17d   : > { %2376 = vrot.lane.b32.xlu1 %v2330_v28, %s3202_s17 }
 0x17e   : > { %v1124_v41 = vpop.permute.xlu0 %1123  ;;  %v3090_v42 = vld [vmem:[#allocation3 + $0x20] sm:$0xff]  }
 0x17f   : > { %1160 = vst.msk [vmem:[#allocation3 + $0x30] sm:$0xf] %vm1147_vm15, %v1124_v41  ;;  %v2373_v47 = vpop.permute.xlu1 %2372  ;;  %2990 = vmatprep.mubr.msk.bf16.mxu1 %vm2518_vm8, %v3090_v42 }
 0x180   : > { %2374 = vrot.lane.b32.xlu0 %v2327_v29, %s3202_s17  ;;  %2418 = vst.msk [vmem:[#allocation3 + $0xc] sm:$0xf] %vm2414_vm7, %v2373_v47 }
 0x181   : > { %2392 = vrot.lane.b32.xlu1 %v2358_v1, %s3202_s17 }
 0x182   : > { %v2371_v3 = vpop.permute.xlu0 %2370 }
 0x183   : > { %2417 = vst.msk [vmem:[#allocation3 + $0x8] sm:$0xf] %vm2414_vm7, %v2371_v3  ;;  %v2389_v53 = vpop.permute.xlu1 %2388 }
 0x184   : > { %2390 = vrot.lane.b32.xlu0 %v2355_v44, %s3202_s17  ;;  %2426 = vst.msk [vmem:[#allocation3 + $0x2c] sm:$0xf] %vm2414_vm7, %v2389_v53 }
 0x185   : > { %2380 = vrot.lane.b32.xlu1 %v2337_v50, %s3202_s17 }
 0x186   : > { %v2387_v56 = vpop.permute.xlu0 %2386 }
 0x187   : > { %2425 = vst.msk [vmem:[#allocation3 + $0x28] sm:$0xf] %vm2414_vm7, %v2387_v56  ;;  %v1114_v58 = vpop.permute.xlu1 %1113 }
 0x188   : > { %2378 = vrot.lane.b32.xlu0 %v2334_v45, %s3202_s17  ;;  %1155 = vst.msk [vmem:[#allocation3 + $0x1c] sm:$0xf] %vm1147_vm15, %v1114_v58 }
 0x189   : > { %2396 = vrot.lane.b32.xlu1 %v2365_v59, %s3202_s17 }
 0x18a   : > { %v1112_v34 = vpop.permute.xlu0 %1111  ;;  %v3093_v54 = vld [vmem:[#allocation3 + $0x8] sm:$0xff]  }
 0x18b   : > { %1154 = vst.msk [vmem:[#allocation3 + $0x18] sm:$0xf] %vm1147_vm15, %v1112_v34  ;;  %v1130_v60 = vpop.permute.xlu1 %1129  ;;  %2983 = vmatmul.mubr.msk.bf16.vlgmr.msra.gmra.mxu0 %vm2518_vm8, %v3093_v54  ;;  %v4206_v54 = vld [vmem:[%s4308_s4] ss:$0 sm:$0xff] }
 0x18c   : > { %2394 = vrot.lane.b32.xlu0 %v2362_v48, %s3202_s17  ;;  %1163 = vst.msk [vmem:[#allocation3 + $0x3c] sm:$0xf] %vm1147_vm15, %v1130_v60 }
 0x18e   : > { %v1128_v37 = vpop.permute.xlu0 %1127  ;;  %v3094_v61 = vld [vmem:[#allocation3 + $0x28] sm:$0xff]  }
 0x18f   : > { %1162 = vst.msk [vmem:[#allocation3 + $0x38] sm:$0xf] %vm1147_vm15, %v1128_v37  ;;  %v1282_v63 = vpop.permute.xlu1 %1281  ;;  %2991 = vmatmul.mubr.msk.bf16.vlgmr.msra.gmra.mxu1 %vm2518_vm8, %v3094_v61 }
 0x190   : > { %1325 = vst.msk [vmem:[#allocation3 + $0x14] sm:$0xf] %vm1319_vm2, %v1282_v63 }
 0x192   : > { %v1280_v24 = vpop.permute.xlu0 %1279 }
 0x193   : > { %1324 = vst.msk [vmem:[#allocation3 + $0x10] sm:$0xf] %vm1319_vm2, %v1280_v24  ;;  %v1298_v0 = vpop.permute.xlu1 %1297 }
 0x194   : > { %1333 = vst.msk [vmem:[#allocation3 + $0x34] sm:$0xf] %vm1319_vm2, %v1298_v0 }
 0x196   : > { %v1296_v7 = vpop.permute.xlu0 %1295 }
 0x197   : > { %1332 = vst.msk [vmem:[#allocation3 + $0x30] sm:$0xf] %vm1319_vm2, %v1296_v7  ;;  %v1286_v10 = vpop.permute.xlu1 %1285 }
 0x198   : > { %1327 = vst.msk [vmem:[#allocation3 + $0x1c] sm:$0xf] %vm1319_vm2, %v1286_v10 }
 0x19a   : > { %v1284_v5 = vpop.permute.xlu0 %1283 }
 0x19b   : > { %1326 = vst.msk [vmem:[#allocation3 + $0x18] sm:$0xf] %vm1319_vm2, %v1284_v5  ;;  %v1302_v25 = vpop.permute.xlu1 %1301 }
 0x19c   : > { %1335 = vst.msk [vmem:[#allocation3 + $0x3c] sm:$0xf] %vm1319_vm2, %v1302_v25 }
 0x19e   : > { %v1300_v4 = vpop.permute.xlu0 %1299 }
 0x19f   : > { %1334 = vst.msk [vmem:[#allocation3 + $0x38] sm:$0xf] %vm1319_vm2, %v1300_v4  ;;  %v1379_v12 = vpop.permute.xlu1 %1378 }
 0x1a0   : > { %1422 = vst.msk [vmem:[#allocation3 + $0x14] sm:$0xf] %vm1416_vm1, %v1379_v12 }
 0x1a2   : > { %v1377_v14 = vpop.permute.xlu0 %1376 }
 0x1a3   : > { %1421 = vst.msk [vmem:[#allocation3 + $0x10] sm:$0xf] %vm1416_vm1, %v1377_v14  ;;  %v1395_v15 = vpop.permute.xlu1 %1394 }
 0x1a4   : > { %1430 = vst.msk [vmem:[#allocation3 + $0x34] sm:$0xf] %vm1416_vm1, %v1395_v15 }
 0x1a6   : > { %v1393_v8 = vpop.permute.xlu0 %1392 }
 0x1a7   : > { %1429 = vst.msk [vmem:[#allocation3 + $0x30] sm:$0xf] %vm1416_vm1, %v1393_v8  ;;  %v1383_v2 = vpop.permute.xlu1 %1382 }
 0x1a8   : > { %1424 = vst.msk [vmem:[#allocation3 + $0x1c] sm:$0xf] %vm1416_vm1, %v1383_v2 }
 0x1aa   : > { %v1381_v16 = vpop.permute.xlu0 %1380 }
 0x1ab   : > { %1423 = vst.msk [vmem:[#allocation3 + $0x18] sm:$0xf] %vm1416_vm1, %v1381_v16  ;;  %v1399_v13 = vpop.permute.xlu1 %1398 }
 0x1ac   : > { %1432 = vst.msk [vmem:[#allocation3 + $0x3c] sm:$0xf] %vm1416_vm1, %v1399_v13 }
 0x1ae   : > { %v1397_v31 = vpop.permute.xlu0 %1396 }
 0x1af   : > { %1431 = vst.msk [vmem:[#allocation3 + $0x38] sm:$0xf] %vm1416_vm1, %v1397_v31  ;;  %v1660_v6 = vpop.permute.xlu1 %1659 }
 0x1b0   : > { %1703 = vst.msk [vmem:[#allocation3 + $0x14] sm:$0xf] %vm1697_vm3, %v1660_v6 }
 0x1b2   : > { %v1658_v9 = vpop.permute.xlu0 %1657 }
 0x1b3   : > { %1702 = vst.msk [vmem:[#allocation3 + $0x10] sm:$0xf] %vm1697_vm3, %v1658_v9  ;;  %v1676_v17 = vpop.permute.xlu1 %1675 }
 0x1b4   : > { %1711 = vst.msk [vmem:[#allocation3 + $0x34] sm:$0xf] %vm1697_vm3, %v1676_v17 }
 0x1b6   : > { %v1674_v27 = vpop.permute.xlu0 %1673 }
 0x1b7   : > { %1710 = vst.msk [vmem:[#allocation3 + $0x30] sm:$0xf] %vm1697_vm3, %v1674_v27  ;;  %v1664_v33 = vpop.permute.xlu1 %1663 }
 0x1b8   : > { %1705 = vst.msk [vmem:[#allocation3 + $0x1c] sm:$0xf] %vm1697_vm3, %v1664_v33 }
 0x1ba   : > { %v1662_v26 = vpop.permute.xlu0 %1661 }
 0x1bb   : > { %1704 = vst.msk [vmem:[#allocation3 + $0x18] sm:$0xf] %vm1697_vm3, %v1662_v26  ;;  %v1680_v11 = vpop.permute.xlu1 %1679 }
 0x1bc   : > { %1713 = vst.msk [vmem:[#allocation3 + $0x3c] sm:$0xf] %vm1697_vm3, %v1680_v11 }
 0x1be   : > { %v1678_v21 = vpop.permute.xlu0 %1677 }
 0x1bf   : > { %1712 = vst.msk [vmem:[#allocation3 + $0x38] sm:$0xf] %vm1697_vm3, %v1678_v21  ;;  %v1829_v32 = vpop.permute.xlu1 %1828 }
 0x1c0   : > { %1872 = vst.msk [vmem:[#allocation3 + $0x14] sm:$0xf] %vm1866_vm4, %v1829_v32 }
 0x1c2   : > { %v1827_v57 = vpop.permute.xlu0 %1826 }
 0x1c3   : > { %1871 = vst.msk [vmem:[#allocation3 + $0x10] sm:$0xf] %vm1866_vm4, %v1827_v57  ;;  %v1845_v23 = vpop.permute.xlu1 %1844 }
 0x1c4   : > { %1880 = vst.msk [vmem:[#allocation3 + $0x34] sm:$0xf] %vm1866_vm4, %v1845_v23 }
 0x1c6   : > { %v1843_v28 = vpop.permute.xlu0 %1842 }
 0x1c7   : > { %1879 = vst.msk [vmem:[#allocation3 + $0x30] sm:$0xf] %vm1866_vm4, %v1843_v28  ;;  %v1833_v36 = vpop.permute.xlu1 %1832 }
 0x1c8   : > { %1874 = vst.msk [vmem:[#allocation3 + $0x1c] sm:$0xf] %vm1866_vm4, %v1833_v36 }
 0x1ca   : > { %v1831_v22 = vpop.permute.xlu0 %1830 }
 0x1cb   : > { %1873 = vst.msk [vmem:[#allocation3 + $0x18] sm:$0xf] %vm1866_vm4, %v1831_v22  ;;  %v1849_v30 = vpop.permute.xlu1 %1848 }
 0x1cc   : > { %1882 = vst.msk [vmem:[#allocation3 + $0x3c] sm:$0xf] %vm1866_vm4, %v1849_v30 }
 0x1ce   : > { %v1847_v35 = vpop.permute.xlu0 %1846 }
 0x1cf   : > { %1881 = vst.msk [vmem:[#allocation3 + $0x38] sm:$0xf] %vm1866_vm4, %v1847_v35  ;;  %v1927_v38 = vpop.permute.xlu1 %1926 }
 0x1d0   : > { %1970 = vst.msk [vmem:[#allocation3 + $0x14] sm:$0xf] %vm1964_vm5, %v1927_v38 }
 0x1d2   : > { %v1925_v62 = vpop.permute.xlu0 %1924 }
 0x1d3   : > { %1969 = vst.msk [vmem:[#allocation3 + $0x10] sm:$0xf] %vm1964_vm5, %v1925_v62  ;;  %v1943_v29 = vpop.permute.xlu1 %1942 }
 0x1d4   : > { %1978 = vst.msk [vmem:[#allocation3 + $0x34] sm:$0xf] %vm1964_vm5, %v1943_v29 }
 0x1d6   : > { %v1941_v18 = vpop.permute.xlu0 %1940 }
 0x1d7   : > { %1977 = vst.msk [vmem:[#allocation3 + $0x30] sm:$0xf] %vm1964_vm5, %v1941_v18  ;;  %v1931_v39 = vpop.permute.xlu1 %1930 }
 0x1d8   : > { %1972 = vst.msk [vmem:[#allocation3 + $0x1c] sm:$0xf] %vm1964_vm5, %v1931_v39 }
 0x1da   : > { %v1929_v41 = vpop.permute.xlu0 %1928 }
 0x1db   : > { %1971 = vst.msk [vmem:[#allocation3 + $0x18] sm:$0xf] %vm1964_vm5, %v1929_v41  ;;  %v1947_v42 = vpop.permute.xlu1 %1946 }
 0x1dc   : > { %1980 = vst.msk [vmem:[#allocation3 + $0x3c] sm:$0xf] %vm1964_vm5, %v1947_v42 }
 0x1de   : > { %v1945_v1 = vpop.permute.xlu0 %1944 }
 0x1df   : > { %1979 = vst.msk [vmem:[#allocation3 + $0x38] sm:$0xf] %vm1964_vm5, %v1945_v1  ;;  %v2208_v20 = vpop.permute.xlu1 %2207 }
 0x1e0   : > { %2251 = vst.msk [vmem:[#allocation3 + $0x14] sm:$0xf] %vm2245_vm6, %v2208_v20 }
 0x1e2   : > { %v2206_v46 = vpop.permute.xlu0 %2205 }
 0x1e3   : > { %2250 = vst.msk [vmem:[#allocation3 + $0x10] sm:$0xf] %vm2245_vm6, %v2206_v46  ;;  %v2224_v40 = vpop.permute.xlu1 %2223 }
 0x1e4   : > { %2259 = vst.msk [vmem:[#allocation3 + $0x34] sm:$0xf] %vm2245_vm6, %v2224_v40 }
 0x1e6   : > { %v2222_v47 = vpop.permute.xlu0 %2221 }
 0x1e7   : > { %2258 = vst.msk [vmem:[#allocation3 + $0x30] sm:$0xf] %vm2245_vm6, %v2222_v47  ;;  %v2212_v19 = vpop.permute.xlu1 %2211 }
 0x1e8   : > { %2253 = vst.msk [vmem:[#allocation3 + $0x1c] sm:$0xf] %vm2245_vm6, %v2212_v19 }
 0x1ea   : > { %v2210_v44 = vpop.permute.xlu0 %2209 }
 0x1eb   : > { %2252 = vst.msk [vmem:[#allocation3 + $0x18] sm:$0xf] %vm2245_vm6, %v2210_v44  ;;  %v2228_v49 = vpop.permute.xlu1 %2227 }
 0x1ec   : > { %2261 = vst.msk [vmem:[#allocation3 + $0x3c] sm:$0xf] %vm2245_vm6, %v2228_v49 }
 0x1ee   : > { %v2226_v3 = vpop.permute.xlu0 %2225 }
 0x1ef   : > { %2260 = vst.msk [vmem:[#allocation3 + $0x38] sm:$0xf] %vm2245_vm6, %v2226_v3  ;;  %v2377_v50 = vpop.permute.xlu1 %2376 }
 0x1f0   : > { %2420 = vst.msk [vmem:[#allocation3 + $0x14] sm:$0xf] %vm2414_vm7, %v2377_v50 }
 0x1f2   : > { %v2375_v43 = vpop.permute.xlu0 %2374 }
 0x1f3   : > { %2419 = vst.msk [vmem:[#allocation3 + $0x10] sm:$0xf] %vm2414_vm7, %v2375_v43  ;;  %v2393_v51 = vpop.permute.xlu1 %2392 }
 0x1f4   : > { %2428 = vst.msk [vmem:[#allocation3 + $0x34] sm:$0xf] %vm2414_vm7, %v2393_v51 }
 0x1f6   : > { %v2391_v52 = vpop.permute.xlu0 %2390 }
 0x1f7   : > { %2427 = vst.msk [vmem:[#allocation3 + $0x30] sm:$0xf] %vm2414_vm7, %v2391_v52  ;;  %v2381_v53 = vpop.permute.xlu1 %2380 }
 0x1f8   : > { %2422 = vst.msk [vmem:[#allocation3 + $0x1c] sm:$0xf] %vm2414_vm7, %v2381_v53 }
 0x1fa   : > { %v2379_v45 = vpop.permute.xlu0 %2378  ;;  %v3095_v55 = vld [vmem:[#allocation3 + $0x10] sm:$0xff]  }
 0x1fb   : > { %2421 = vst.msk [vmem:[#allocation3 + $0x18] sm:$0xf] %vm2414_vm7, %v2379_v45  ;;  %v2397_v56 = vpop.permute.xlu1 %2396  ;;  %2986 = vmatprep.mubr.msk.bf16.mxu0 %vm2518_vm8, %v3095_v55 }
 0x1fc   : > { %2430 = vst.msk [vmem:[#allocation3 + $0x3c] sm:$0xf] %vm2414_vm7, %v2397_v56 }
 0x1fe   : > { %v2395_v59 = vpop.permute.xlu0 %2394  ;;  %v3096_v58 = vld [vmem:[#allocation3 + $0x30] sm:$0xff]  }
 0x1ff   : > { %2429 = vst.msk [vmem:[#allocation3 + $0x38] sm:$0xf] %vm2414_vm7, %v2395_v59  ;;  %2994 = vmatprep.mubr.msk.bf16.mxu1 %vm2518_vm8, %v3096_v58 }
 0x202   : > { %v3097_v48 = vld [vmem:[#allocation3 + $0x18] sm:$0xff]  }
 0x203   : > { %2987 = vmatmul.mubr.msk.bf16.gmra.mxu0 %vm2518_vm8, %v3097_v48 }
 0x206   : > { %v3098_v34 = vld [vmem:[#allocation3 + $0x38] sm:$0xff]  }
 0x207   : > { %2995 = vmatmul.mubr.msk.bf16.gmra.mxu1 %vm2518_vm8, %v3098_v34 }
 0x24b   : > { %v2984_v60 = vpop.f32.mrf.mxu0 }
 0x24c   : > { %v2590_v37 = vadd.f32 %v2984_v60, %v4206_v54 }
 0x24d   : > { %v2581_v61 = vpop.f32.mrf.mxu0 }
 0x24e   : > { %v2646_v63 = vmax.f32 %v2590_v37, 0.0  ;;  %v2582_v24 = vadd.f32 %v4206_v54, %v2581_v61 }
 0x24f   : > { %v2985_v0 = vpop.f32.mrf.mxu0  ;;  %v2992_v7 = vpop.f32.mrf.mxu1 }
 0x250   : > { %2662 = vst [vmem:[%s3575_s28 + $0x10] sm:$0xff] %v2646_v63  ;;  %v2644_v10 = vmax.f32 %v2582_v24, 0.0  ;;  %v2593_v5 = vadd.f32 %v2985_v0, %v4206_v54  ;;  %v2622_v25 = vadd.f32 %v2992_v7, %v4206_v54 }
 0x251   : > { %v2584_v4 = vpop.f32.mrf.mxu0  ;;  %v2613_v12 = vpop.f32.mrf.mxu1 }
 0x252   : > { %2660 = vst [vmem:[%s3575_s28] sm:$0xff] %v2644_v10  ;;  %v2647_v14 = vmax.f32 %v2593_v5, 0.0  ;;  %v2654_v15 = vmax.f32 %v2622_v25, 0.0  ;;  %v2585_v8 = vadd.f32 %v4206_v54, %v2584_v4  ;;  %v2614_v2 = vadd.f32 %v4206_v54, %v2613_v12 }
 0x253   : > { %v2993_v16 = vpop.f32.mrf.mxu1 }
 0x254   : > { %2663 = vst [vmem:[%s3575_s28 + $0x18] sm:$0xff] %v2647_v14  ;;  %2670 = vst [vmem:[%s3575_s28 + $0x50] sm:$0xff] %v2654_v15  ;;  %v2645_v13 = vmax.f32 %v2585_v8, 0.0  ;;  %v2652_v31 = vmax.f32 %v2614_v2, 0.0  ;;  %v2625_v6 = vadd.f32 %v2993_v16, %v4206_v54 }
 0x255   : > { %v2616_v9 = vpop.f32.mrf.mxu1 }
 0x256   : > { %2661 = vst [vmem:[%s3575_s28 + $0x8] sm:$0xff] %v2645_v13  ;;  %2668 = vst [vmem:[%s3575_s28 + $0x40] sm:$0xff] %v2652_v31  ;;  %v2655_v17 = vmax.f32 %v2625_v6, 0.0  ;;  %v2617_v27 = vadd.f32 %v4206_v54, %v2616_v9 }
 0x258   : > { %2671 = vst [vmem:[%s3575_s28 + $0x58] sm:$0xff] %v2655_v17  ;;  %v2653_v33 = vmax.f32 %v2617_v27, 0.0 }
 0x25a   : > { %2669 = vst [vmem:[%s3575_s28 + $0x48] sm:$0xff] %v2653_v33 }
 0x2c3   : > { %v2988_v26 = vpop.f32.mrf.mxu0 }
 0x2c4   : > { %v2606_v11 = vadd.f32 %v2988_v26, %v4206_v54 }
 0x2c5   : > { %v2597_v21 = vpop.f32.mrf.mxu0 }
 0x2c6   : > { %v2650_v32 = vmax.f32 %v2606_v11, 0.0  ;;  %v2598_v57 = vadd.f32 %v4206_v54, %v2597_v21 }
 0x2c7   : > { %v2989_v23 = vpop.f32.mrf.mxu0  ;;  %v2996_v28 = vpop.f32.mrf.mxu1 }
 0x2c8   : > { %2666 = vst [vmem:[%s3575_s28 + $0x30] sm:$0xff] %v2650_v32  ;;  %v2648_v36 = vmax.f32 %v2598_v57, 0.0  ;;  %v2609_v22 = vadd.f32 %v2989_v23, %v4206_v54  ;;  %v2638_v30 = vadd.f32 %v2996_v28, %v4206_v54 }
 0x2c9   : > { %v2600_v35 = vpop.f32.mrf.mxu0  ;;  %v2629_v38 = vpop.f32.mrf.mxu1 }
 0x2ca   : > { %2664 = vst [vmem:[%s3575_s28 + $0x20] sm:$0xff] %v2648_v36  ;;  %v2651_v62 = vmax.f32 %v2609_v22, 0.0  ;;  %v2658_v29 = vmax.f32 %v2638_v30, 0.0  ;;  %v2601_v18 = vadd.f32 %v4206_v54, %v2600_v35  ;;  %v2630_v39 = vadd.f32 %v4206_v54, %v2629_v38 }
 0x2cb   : > { %v2997_v41 = vpop.f32.mrf.mxu1 }
 0x2cc   : > { %2667 = vst [vmem:[%s3575_s28 + $0x38] sm:$0xff] %v2651_v62  ;;  %2674 = vst [vmem:[%s3575_s28 + $0x70] sm:$0xff] %v2658_v29  ;;  %v2649_v42 = vmax.f32 %v2601_v18, 0.0  ;;  %v2656_v1 = vmax.f32 %v2630_v39, 0.0  ;;  %v2641_v20 = vadd.f32 %v2997_v41, %v4206_v54 }
 0x2cd   : > { %v2632_v46 = vpop.f32.mrf.mxu1 }
 0x2ce   : > { %2665 = vst [vmem:[%s3575_s28 + $0x28] sm:$0xff] %v2649_v42  ;;  %2672 = vst [vmem:[%s3575_s28 + $0x60] sm:$0xff] %v2656_v1  ;;  %v2659_v40 = vmax.f32 %v2641_v20, 0.0  ;;  %v2633_v47 = vadd.f32 %v4206_v54, %v2632_v46 }
 0x2d0   : > { %2675 = vst [vmem:[%s3575_s28 + $0x78] sm:$0xff] %v2659_v40  ;;  %v2657_v19 = vmax.f32 %v2633_v47, 0.0 }
 0x2d2   : > { %2673 = vst [vmem:[%s3575_s28 + $0x68] sm:$0xff] %v2657_v19 }
 0x2d3   : > { %3112 = shalt.err (!%p3109_p1)
}
 0x2d4   : > { %s3113_s12 = scalar_lea.hbm %s4244_s16, 2048  ;;  %s3117_s30 = scalar_lea.hbm %s4309_s5, 8192 }
 0x2d5   : > { %p3114_p2 = scmp.ne.s32.totalorder %s4244_s16, %s3113_s12  ;;  %p3118_p6 = scmp.lt.s32.totalorder %s4244_s16, %s4309_s5 }
 0x2d6   : > { %p3119_p7 = scmp.lt.s32.totalorder %s3117_s30, %s3113_s12 }
 0x2d7   : > { %p3115_p4 = pnand %p3114_p2, %p3286_p3 }
 0x2d8   : > { %p3120_p9 = por %p3119_p7, %p3118_p6 }
 0x2d9   : > { %p3116_p5 = pneg %p3115_p4 }
 0x2db   : > { %p3121_p10 = pnand %p3120_p9, %p3116_p5 }
 0x2dd   : > { %3124 = shalt.err (!%p3121_p10)
}
 0x2de   : > { %s3204_s9 = smov 128  }
 0x2df   : > { %3006 = dma.vmem_to_hbm [thread:$0]  (%p3286_p3), %s4247_s22, 2048, %s4244_s16, %s4252_s29, %s3204_s9, %s3204_s9, %s3196_s13  }
 0x2e0 PF: > { %p3012_p11 = scmp.ge.s32.totalorder %s3191_s25, 2  ;;  %s2709_s17 = sand.u32 1, %s3163_s18  }
 0x2e1   : > { %s2710_s10 = scalar_lea.sflag [#allocation5], %s2709_s17 }
 0x2e2   : > { %p3009_p12 = pnand %p3012_p11, %p3295_p8 }
 0x2e4   : > { %p3010_p13 = pneg %p3009_p12 }
 0x2e6   : > { %3158 = dma.done.wait (%p3010_p13), %s2710_s10, 2048  }
 0x2e7   : > { %3160 = vsyncadd (%p3010_p13), %s2710_s10, 4294965248  ;;  %s18_s25 = sadd.s32 1, %s3191_s25   ;;  %s4329_s6 = sld [smem:[#allocation7_spill]] }
 0x2e8   : > { %p15_p0 = scmp.ge.s32.totalorder %s18_s25, 6   ;;  %s4330_s13 = sld [smem:[#allocation8_spill]] }
 0x2e9   : > { %s4331_s18 = smov %s3167_s19  ;;  %s4332_s19 = smov %s3171_s20 }
 0x2ea   : > { %s4333_s20 = smov %s3304_s11  ;;  %s4334_s21 = smov %s3183_s23 }
 0x2eb   : > { %s4335_s22 = smov %s3187_s24  ;;  %17 = sbr.rel (!%p15_p0) target bundleno = 5 (0x5), region = 107 }
 0x2ed   : > { %s4336_s23 = smov %s4329_s6 }
 0x2ee   : > { %s4337_s24 = smov %s4330_s13 }
 0x2f0   :  { %2715 = vsyncpa [#allocation5], 1 }
 0x2f1   :  { %2717 = vsyncpa [#allocation5 + $0x1], 1 }

</bundles_post_ra>
